<compile_context>
chip_gen: v7x
topology: tpu7x:2x2x1
jax: 0.10.0
libtpu: 0.0.40
codegen_flags: <defaults>
</compile_context>

<pallas_src>
import functools
import math

import jax
import jax.numpy as jnp
from jax.experimental import pallas as pl
from jax.experimental.pallas import tpu as pltpu

_LN_EPS = 1e-5  # nn.LayerNorm default


def _layer_norm(x, g, b):
    mu = jnp.mean(x, axis=-1, keepdims=True)
    var = jnp.mean(jnp.square(x - mu), axis=-1, keepdims=True)
    return (x - mu) * jax.lax.rsqrt(var + _LN_EPS) * g + b


def _erf(x):
    # Abramowitz & Stegun 7.1.26 rational approximation, |err| < 1.5e-7.
    # 1/(1 + p*|x|) is evaluated on the EUP (approx reciprocal) to lighten
    # the VALU load on the (NB*L, 4C) hmid tensor.
    a1, a2, a3, a4, a5 = (0.254829592, -0.284496736, 1.421413741,
                          -1.453152027, 1.061405429)
    p = 0.3275911
    s = jnp.where(x >= 0, 1.0, -1.0)
    ax = jnp.abs(x)
    t = pl.reciprocal(1.0 + p * ax, approx=True)
    poly = ((((a5 * t + a4) * t + a3) * t + a2) * t + a1) * t
    return s * (1.0 - poly * jnp.exp(-ax * ax))


def _gelu_exact(x):
    # nn.GELU() default is the exact (erf-based) formulation.
    return 0.5 * x * (1.0 + _erf(x * (1.0 / math.sqrt(2.0))))


def _transformer_kernel(x_ref, g1, b1, wq, bq, wk, bk, wv, bv, wo, bo,
                        g2, b2, wfc, bfc, wpj, bpj, o_ref, *, n_head):
    """One grid step = one (batch block, layer) pair on a resident (NB,L,C) slab."""
    layer = pl.program_id(1)
    NB, L, C = x_ref.shape
    D = C // n_head

    # Layer 0: seed the resident accumulator (output block index is constant
    # along the layer axis, so the slab lives in VMEM for the whole stack).
    @pl.when(layer == 0)
    def _():
        o_ref[...] = x_ref[...]

    x = o_ref[...].reshape(NB * L, C)                      # (NB*L, C) f32

    # ---- attention branch: ln_1 -> multi-head self-attention -> residual ----
    xn = _layer_norm(x, g1[0], b1[0])
    xb = xn.astype(jnp.bfloat16)
    # 1/sqrt(D) scale is pre-folded into wq/bq at parameter-stacking time.
    q = jnp.dot(xb, wq[0], preferred_element_type=jnp.float32) + bq[0]
    k = jnp.dot(xb, wk[0], preferred_element_type=jnp.float32) + bk[0]
    v = jnp.dot(xb, wv[0], preferred_element_type=jnp.float32) + bv[0]
    # Cast once (hoisted out of the head loop), keep the batch axis for attention.
    qb = q.astype(jnp.bfloat16).reshape(NB, L, C)
    kb = k.astype(jnp.bfloat16).reshape(NB, L, C)
    vb = v.astype(jnp.bfloat16).reshape(NB, L, C)

    # TODO(synk): attn_mask support omitted (attn_mask is None in this config).
    ctx_heads = []
    for h in range(n_head):
        sl = slice(h * D, (h + 1) * D)
        s = jnp.einsum("bqd,bkd->bqk", qb[:, :, sl], kb[:, :, sl],
                       preferred_element_type=jnp.float32)            # (NB,L,L)
        s = s - jnp.max(s, axis=-1, keepdims=True)
        p = jnp.exp(s)
        p = p * pl.reciprocal(jnp.sum(p, axis=-1, keepdims=True), approx=True)
        ctx = jnp.einsum("bqk,bkd->bqd", p.astype(jnp.bfloat16), vb[:, :, sl],
                         preferred_element_type=jnp.float32)           # (NB,L,D)
        ctx_heads.append(ctx.astype(jnp.bfloat16))
    # Single full-depth (K = C) out-projection matmul.
    ctx_all = jnp.concatenate(ctx_heads, axis=-1).reshape(NB * L, C)   # bf16
    x = x + jnp.dot(ctx_all, wo[0], preferred_element_type=jnp.float32) + bo[0]

    # ---- MLP branch: ln_2 -> c_fc -> GELU -> c_proj -> residual ----
    yn = _layer_norm(x, g2[0], b2[0])
    hmid = jnp.dot(yn.astype(jnp.bfloat16), wfc[0],
                   preferred_element_type=jnp.float32) + bfc[0]
    hmid = _gelu_exact(hmid)
    y = jnp.dot(hmid.astype(jnp.bfloat16), wpj[0],
                preferred_element_type=jnp.float32) + bpj[0]

    o_ref[...] = (x + y).reshape(NB, L, C)


_PARAM_ORDER = ("g1", "b1", "wq", "bq", "wk", "bk", "wv", "bv", "wo", "bo",
                "g2", "b2", "wfc", "bfc", "wpj", "bpj")
_BF16_PARAMS = frozenset({"wq", "wk", "wv", "wo", "wfc", "wpj"})


def _pick_batch_block(n, cap=8):
    """Largest divisor of n <= cap while keeping >= 2 batch grid steps (megacore)."""
    if n <= 1:
        return 1
    target = min(cap, max(1, n // 2))
    for nb in range(target, 0, -1):
        if n % nb == 0:
            return nb
    return 1


def _vmem_limit_bytes():
    """~85% of physical VMEM: ~54 MiB on v7x (64 MiB/TC), ~109 MiB on v5e/v6e."""
    cap = None
    try:
        cap = getattr(pltpu.get_tpu_info(), "vmem_capacity_bytes", None)
    except Exception:
        cap = None
    if not cap:
        cap = 128 * 1024 * 1024
    return int(min(max(cap * 0.85, 32 * 1024 * 1024), 120 * 1024 * 1024))


def transformer_forward(x_lnc, layer_params, n_head, batch_block=None):
    """Transformer.forward.  x_lnc: (L, N, C) (PyTorch seq-first convention)."""
    x = jnp.transpose(x_lnc, (1, 0, 2)).astype(jnp.float32)   # -> (N, L, C)
    N, L, C = x.shape
    layers = len(layer_params)
    D = C // n_head
    scale = 1.0 / math.sqrt(D)

    NB = batch_block if batch_block is not None else _pick_batch_block(N)
    assert N % NB == 0, "batch must be divisible by the batch block"
    n_steps = N // NB

    # Stack per-layer params into (layers, ...) arrays; matmul weights -> bf16;
    # fold the attention scale into wq/bq (one-time host-side constant fold).
    stacked = []
    for name in _PARAM_ORDER:
        p = jnp.stack([lp[name] for lp in layer_params])        # (layers, ...)
        if name in ("wq", "bq"):
            p = p * scale
        if name in _BF16_PARAMS:
            p = p.astype(jnp.bfloat16)
        stacked.append(p)

    def p_spec(p):
        # All stacked params are 3-D: (layers, r, c); one layer's slab per step.
        return pl.BlockSpec((1,) + p.shape[1:], lambda n, l: (l, 0, 0))

    # Advisory cost hint for XLA scheduling (weights re-fetched per batch step).
    flops = int(layers * N * (24 * L * C * C + 4 * L * L * C))
    transcendentals = int(layers * N * (n_head * L * L + 8 * L * C))
    weight_bytes_per_layer = 12 * C * C * 2 + 13 * C * 4
    bytes_accessed = int(2 * N * L * C * 4
                         + n_steps * layers * weight_bytes_per_layer)

    out = pl.pallas_call(
        functools.partial(_transformer_kernel, n_head=n_head),
        out_shape=jax.ShapeDtypeStruct((N, L, C), jnp.float32),
        grid_spec=pltpu.PrefetchScalarGridSpec(
            num_scalar_prefetch=0,
            grid=(n_steps, layers),            # layer axis innermost (carry)
            in_specs=[pl.BlockSpec((NB, L, C), lambda n, l: (n, 0, 0))]
                     + [p_spec(p) for p in stacked],
            out_specs=pl.BlockSpec((NB, L, C), lambda n, l: (n, 0, 0)),
        ),
        compiler_params=pltpu.CompilerParams(
            dimension_semantics=("parallel", "arbitrary"),
            vmem_limit_bytes=_vmem_limit_bytes()),
        cost_estimate=pl.CostEstimate(flops=flops,
                                      transcendentals=transcendentals,
                                      bytes_accessed=bytes_accessed),
    )(x, *stacked)
    return jnp.transpose(out, (1, 0, 2))                        # -> (L, N, C)


def init_transformer_params(key, width, layers, heads):
    """Deterministic synthetic parameters.  Linear weights are stored already
    transposed to (in, out) so the kernel does y = x @ W + b."""
    C = width
    all_params = []
    for i in range(layers):
        ks = jax.random.split(jax.random.fold_in(key, i), 16)

        def nrm(k, shape, s):
            return s * jax.random.normal(k, shape, jnp.float32)

        p = {
            "g1": jnp.ones((1, C), jnp.float32),
            "b1": nrm(ks[0], (1, C), 0.01),
            "wq": nrm(ks[1], (C, C), 0.02), "bq": nrm(ks[2], (1, C), 0.01),
            "wk": nrm(ks[3], (C, C), 0.02), "bk": nrm(ks[4], (1, C), 0.01),
            "wv": nrm(ks[5], (C, C), 0.02), "bv": nrm(ks[6], (1, C), 0.01),
            "wo": nrm(ks[7], (C, C), 0.02), "bo": nrm(ks[8], (1, C), 0.01),
            "g2": jnp.ones((1, C), jnp.float32),
            "b2": nrm(ks[9], (1, C), 0.01),
            "wfc": nrm(ks[10], (C, 4 * C), 0.02),
            "bfc": nrm(ks[11], (1, 4 * C), 0.01),
            "wpj": nrm(ks[12], (4 * C, C), 0.02),
            "bpj": nrm(ks[13], (1, C), 0.01),
        }
        all_params.append(p)
    return all_params


def _ref_transformer(x_lnc, layer_params, n_head):
    """Pure-JAX reference mirroring the PyTorch module (fp32, exact GELU)."""
    with jax.default_matmul_precision("highest"):
        x = x_lnc.astype(jnp.float32)
        L, N, C = x.shape
        D = C // n_head

        def ln(z, g, b):
            mu = z.mean(-1, keepdims=True)
            var = ((z - mu) ** 2).mean(-1, keepdims=True)
            return (z - mu) / jnp.sqrt(var + _LN_EPS) * g + b

        for p in layer_params:
            xn = ln(x, p["g1"], p["b1"])
            q = (xn @ p["wq"] + p["bq"]).reshape(L, N, n_head, D)
            k = (xn @ p["wk"] + p["bk"]).reshape(L, N, n_head, D)
            v = (xn @ p["wv"] + p["bv"]).reshape(L, N, n_head, D)
            s = jnp.einsum("lnhd,mnhd->nhlm", q, k) / math.sqrt(D)
            a = jax.nn.softmax(s, axis=-1)
            o = jnp.einsum("nhlm,mnhd->lnhd", a, v).reshape(L, N, C)
            x = x + (o @ p["wo"] + p["bo"])
            yn = ln(x, p["g2"], p["b2"])
            hmid = jax.nn.gelu(yn @ p["wfc"] + p["bfc"], approximate=False)
            x = x + (hmid @ p["wpj"] + p["bpj"])
        return x


if __name__ == "__main__":
    width, layers, heads = 32, 2, 4
    seq_len, batch = 8, 2

    key = jax.random.PRNGKey(0)
    kx, kp = jax.random.split(key)
    x = jax.random.normal(kx, (seq_len, batch, width), jnp.float32)
    params = init_transformer_params(kp, width, layers, heads)

    out = transformer_forward(x, params, heads)
    out = jax.block_until_ready(out)

    ref = _ref_transformer(x, params, heads)
    assert out.shape == (seq_len, batch, width)
    max_diff = float(jnp.max(jnp.abs(out - ref)))
    assert bool(jnp.allclose(out, ref, atol=2e-2, rtol=2e-2)), \
        f"max abs diff {max_diff}"

    print("KERNEL_OK")
</pallas_src>

<mosaic_0001>
module attributes {stable_mosaic.version = 11 : i64} {
  func.func @_transformer_kernel(%arg0: i32, %arg1: i32, %arg2: memref<1x8x32xf32, #tpu.memory_space<vmem>>, %arg3: memref<1x1x32xf32, #tpu.memory_space<vmem>>, %arg4: memref<1x1x32xf32, #tpu.memory_space<vmem>>, %arg5: memref<1x32x32xbf16, #tpu.memory_space<vmem>>, %arg6: memref<1x1x32xf32, #tpu.memory_space<vmem>>, %arg7: memref<1x32x32xbf16, #tpu.memory_space<vmem>>, %arg8: memref<1x1x32xf32, #tpu.memory_space<vmem>>, %arg9: memref<1x32x32xbf16, #tpu.memory_space<vmem>>, %arg10: memref<1x1x32xf32, #tpu.memory_space<vmem>>, %arg11: memref<1x32x32xbf16, #tpu.memory_space<vmem>>, %arg12: memref<1x1x32xf32, #tpu.memory_space<vmem>>, %arg13: memref<1x1x32xf32, #tpu.memory_space<vmem>>, %arg14: memref<1x1x32xf32, #tpu.memory_space<vmem>>, %arg15: memref<1x32x128xbf16, #tpu.memory_space<vmem>>, %arg16: memref<1x1x128xf32, #tpu.memory_space<vmem>>, %arg17: memref<1x128x32xbf16, #tpu.memory_space<vmem>>, %arg18: memref<1x1x32xf32, #tpu.memory_space<vmem>>, %arg19: memref<1x8x32xf32, #tpu.memory_space<vmem>>) attributes {dimension_semantics = [#tpu.dimension_semantics<parallel>, #tpu.dimension_semantics<arbitrary>], iteration_bounds = array<i64: 2, 2>, scalar_prefetch = 0 : i64, scratch_operands = 0 : i64, tpu.core_type = #tpu.core_type<tc>, window_params = [{transform_indices = @transform_0, window_bounds = array<i64: 1, 8, 32>}, {transform_indices = @transform_1, window_bounds = array<i64: 1, 1, 32>}, {transform_indices = @transform_2, window_bounds = array<i64: 1, 1, 32>}, {transform_indices = @transform_3, window_bounds = array<i64: 1, 32, 32>}, {transform_indices = @transform_4, window_bounds = array<i64: 1, 1, 32>}, {transform_indices = @transform_5, window_bounds = array<i64: 1, 32, 32>}, {transform_indices = @transform_6, window_bounds = array<i64: 1, 1, 32>}, {transform_indices = @transform_7, window_bounds = array<i64: 1, 32, 32>}, {transform_indices = @transform_8, window_bounds = array<i64: 1, 1, 32>}, {transform_indices = @transform_9, window_bounds = array<i64: 1, 32, 32>}, {transform_indices = @transform_10, window_bounds = array<i64: 1, 1, 32>}, {transform_indices = @transform_11, window_bounds = array<i64: 1, 1, 32>}, {transform_indices = @transform_12, window_bounds = array<i64: 1, 1, 32>}, {transform_indices = @transform_13, window_bounds = array<i64: 1, 32, 128>}, {transform_indices = @transform_14, window_bounds = array<i64: 1, 1, 128>}, {transform_indices = @transform_15, window_bounds = array<i64: 1, 128, 32>}, {transform_indices = @transform_16, window_bounds = array<i64: 1, 1, 32>}, {transform_indices = @transform_17, window_bounds = array<i64: 1, 8, 32>}]} {
    %c0_i32 = arith.constant 0 : i32
    %0 = arith.cmpi eq, %arg1, %c0_i32 : i32
    %1 = arith.extui %0 : i1 to i32
    %c0_i32_0 = arith.constant 0 : i32
    %2 = arith.cmpi ne, %1, %c0_i32_0 : i32
    scf.if %2 {
      %c0_100 = arith.constant 0 : index
      %c0_101 = arith.constant 0 : index
      %c0_102 = arith.constant 0 : index
      %222 = vector.load %arg2[%c0_100, %c0_101, %c0_102] : memref<1x8x32xf32, #tpu.memory_space<vmem>>, vector<1x8x32xf32>
      %c0_103 = arith.constant 0 : index
      %c0_104 = arith.constant 0 : index
      %c0_105 = arith.constant 0 : index
      %223 = vector.load %arg19[%c0_103, %c0_104, %c0_105] : memref<1x8x32xf32, #tpu.memory_space<vmem>>, vector<1x8x32xf32>
      tpu.vector_store %arg19[%c0_103, %c0_104, %c0_105], %222 {strides = array<i32>} : memref<1x8x32xf32, #tpu.memory_space<vmem>>, vector<1x8x32xf32>,
    } else {
    }
    %c0 = arith.constant 0 : index
    %c0_1 = arith.constant 0 : index
    %c0_2 = arith.constant 0 : index
    %3 = vector.load %arg19[%c0, %c0_1, %c0_2] : memref<1x8x32xf32, #tpu.memory_space<vmem>>, vector<1x8x32xf32>
    %4 = vector.shape_cast %3 : vector<1x8x32xf32> to vector<8x32xf32>
    %c0_3 = arith.constant 0 : index
    %c0_4 = arith.constant 0 : index
    %c0_5 = arith.constant 0 : index
    %5 = vector.load %arg3[%c0_3, %c0_4, %c0_5] : memref<1x1x32xf32, #tpu.memory_space<vmem>>, vector<1x1x32xf32>
    %6 = vector.shape_cast %5 : vector<1x1x32xf32> to vector<1x32xf32>
    %c0_6 = arith.constant 0 : index
    %c0_7 = arith.constant 0 : index
    %c0_8 = arith.constant 0 : index
    %7 = vector.load %arg4[%c0_6, %c0_7, %c0_8] : memref<1x1x32xf32, #tpu.memory_space<vmem>>, vector<1x1x32xf32>
    %8 = vector.shape_cast %7 : vector<1x1x32xf32> to vector<1x32xf32>
    %cst = arith.constant dense<0.000000e+00> : vector<8xf32>
    %9 = vector.multi_reduction <add>, %4, %cst [1] : vector<8x32xf32> to vector<8xf32>
    %10 = vector.shape_cast %9 : vector<8xf32> to vector<8x1xf32>
    %cst_9 = arith.constant 3.200000e+01 : f32
    %11 = vector.broadcast %cst_9 : f32 to vector<8x1xf32>
    %12 = arith.divf %10, %11 : vector<8x1xf32>
    %13 = vector.broadcast %12 : vector<8x1xf32> to vector<8x32xf32>
    %14 = arith.subf %4, %13 : vector<8x32xf32>
    %15 = arith.mulf %14, %14 : vector<8x32xf32>
    %cst_10 = arith.constant dense<0.000000e+00> : vector<8xf32>
    %16 = vector.multi_reduction <add>, %15, %cst_10 [1] : vector<8x32xf32> to vector<8xf32>
    %17 = vector.shape_cast %16 : vector<8xf32> to vector<8x1xf32>
    %cst_11 = arith.constant 3.200000e+01 : f32
    %18 = vector.broadcast %cst_11 : f32 to vector<8x1xf32>
    %19 = arith.divf %17, %18 : vector<8x1xf32>
    %20 = vector.broadcast %12 : vector<8x1xf32> to vector<8x32xf32>
    %21 = arith.subf %4, %20 : vector<8x32xf32>
    %cst_12 = arith.constant 9.99999974E-6 : f32
    %22 = vector.broadcast %cst_12 : f32 to vector<8x1xf32>
    %23 = arith.addf %19, %22 : vector<8x1xf32>
    %24 = math.rsqrt %23 : vector<8x1xf32>
    %25 = vector.broadcast %24 : vector<8x1xf32> to vector<8x32xf32>
    %26 = arith.mulf %21, %25 : vector<8x32xf32>
    %27 = vector.broadcast %6 : vector<1x32xf32> to vector<8x32xf32>
    %28 = arith.mulf %26, %27 : vector<8x32xf32>
    %29 = vector.broadcast %8 : vector<1x32xf32> to vector<8x32xf32>
    %30 = arith.addf %28, %29 : vector<8x32xf32>
    %31 = arith.truncf %30 : vector<8x32xf32> to vector<8x32xbf16>
    %c0_13 = arith.constant 0 : index
    %c0_14 = arith.constant 0 : index
    %c0_15 = arith.constant 0 : index
    %32 = vector.load %arg5[%c0_13, %c0_14, %c0_15] : memref<1x32x32xbf16, #tpu.memory_space<vmem>>, vector<1x32x32xbf16>
    %33 = vector.shape_cast %32 : vector<1x32x32xbf16> to vector<32x32xbf16>
    %cst_16 = arith.constant dense<0.000000e+00> : vector<8x32xf32>
    %34 = tpu.matmul %31, %33, %cst_16 {dimension_numbers = #tpu.dot_dimension_numbers<[1], [0], [0], [1], [0, 0, 1, 1], [], []>} : vector<8x32xbf16>, vector<32x32xbf16>, vector<8x32xf32> -> vector<8x32xf32>
    %c0_17 = arith.constant 0 : index
    %c0_18 = arith.constant 0 : index
    %c0_19 = arith.constant 0 : index
    %35 = vector.load %arg6[%c0_17, %c0_18, %c0_19] : memref<1x1x32xf32, #tpu.memory_space<vmem>>, vector<1x1x32xf32>
    %36 = vector.shape_cast %35 : vector<1x1x32xf32> to vector<1x32xf32>
    %37 = vector.broadcast %36 : vector<1x32xf32> to vector<8x32xf32>
    %38 = arith.addf %34, %37 : vector<8x32xf32>
    %c0_20 = arith.constant 0 : index
    %c0_21 = arith.constant 0 : index
    %c0_22 = arith.constant 0 : index
    %39 = vector.load %arg7[%c0_20, %c0_21, %c0_22] : memref<1x32x32xbf16, #tpu.memory_space<vmem>>, vector<1x32x32xbf16>
    %40 = vector.shape_cast %39 : vector<1x32x32xbf16> to vector<32x32xbf16>
    %cst_23 = arith.constant dense<0.000000e+00> : vector<8x32xf32>
    %41 = tpu.matmul %31, %40, %cst_23 {dimension_numbers = #tpu.dot_dimension_numbers<[1], [0], [0], [1], [0, 0, 1, 1], [], []>} : vector<8x32xbf16>, vector<32x32xbf16>, vector<8x32xf32> -> vector<8x32xf32>
    %c0_24 = arith.constant 0 : index
    %c0_25 = arith.constant 0 : index
    %c0_26 = arith.constant 0 : index
    %42 = vector.load %arg8[%c0_24, %c0_25, %c0_26] : memref<1x1x32xf32, #tpu.memory_space<vmem>>, vector<1x1x32xf32>
    %43 = vector.shape_cast %42 : vector<1x1x32xf32> to vector<1x32xf32>
    %44 = vector.broadcast %43 : vector<1x32xf32> to vector<8x32xf32>
    %45 = arith.addf %41, %44 : vector<8x32xf32>
    %c0_27 = arith.constant 0 : index
    %c0_28 = arith.constant 0 : index
    %c0_29 = arith.constant 0 : index
    %46 = vector.load %arg9[%c0_27, %c0_28, %c0_29] : memref<1x32x32xbf16, #tpu.memory_space<vmem>>, vector<1x32x32xbf16>
    %47 = vector.shape_cast %46 : vector<1x32x32xbf16> to vector<32x32xbf16>
    %cst_30 = arith.constant dense<0.000000e+00> : vector<8x32xf32>
    %48 = tpu.matmul %31, %47, %cst_30 {dimension_numbers = #tpu.dot_dimension_numbers<[1], [0], [0], [1], [0, 0, 1, 1], [], []>} : vector<8x32xbf16>, vector<32x32xbf16>, vector<8x32xf32> -> vector<8x32xf32>
    %c0_31 = arith.constant 0 : index
    %c0_32 = arith.constant 0 : index
    %c0_33 = arith.constant 0 : index
    %49 = vector.load %arg10[%c0_31, %c0_32, %c0_33] : memref<1x1x32xf32, #tpu.memory_space<vmem>>, vector<1x1x32xf32>
    %50 = vector.shape_cast %49 : vector<1x1x32xf32> to vector<1x32xf32>
    %51 = vector.broadcast %50 : vector<1x32xf32> to vector<8x32xf32>
    %52 = arith.addf %48, %51 : vector<8x32xf32>
    %53 = arith.truncf %38 : vector<8x32xf32> to vector<8x32xbf16>
    %54 = vector.shape_cast %53 : vector<8x32xbf16> to vector<1x8x32xbf16>
    %55 = arith.truncf %45 : vector<8x32xf32> to vector<8x32xbf16>
    %56 = vector.shape_cast %55 : vector<8x32xbf16> to vector<1x8x32xbf16>
    %57 = arith.truncf %52 : vector<8x32xf32> to vector<8x32xbf16>
    %58 = vector.shape_cast %57 : vector<8x32xbf16> to vector<1x8x32xbf16>
    %59 = vector.extract_strided_slice %54 {offsets = [0, 0, 0], sizes = [1, 8, 8], strides = [1, 1, 1]} : vector<1x8x32xbf16> to vector<1x8x8xbf16>
    %60 = vector.extract_strided_slice %56 {offsets = [0, 0, 0], sizes = [1, 8, 8], strides = [1, 1, 1]} : vector<1x8x32xbf16> to vector<1x8x8xbf16>
    "tpu.trace_start"() <{level = 10 : i32, message = "bqd,bkd->bqk"}> : () -> ()
    %cst_34 = arith.constant dense<0.000000e+00> : vector<1x8x8xf32>
    %61 = tpu.matmul %59, %60, %cst_34 {dimension_numbers = #tpu.dot_dimension_numbers<[2], [2], [1], [1], [0, 0, 0, 1, 1, 1], [0], [0]>} : vector<1x8x8xbf16>, vector<1x8x8xbf16>, vector<1x8x8xf32> -> vector<1x8x8xf32>
    "tpu.trace_stop"() : () -> ()
    %cst_35 = arith.constant dense<0xFF800000> : vector<1x8xf32>
    %62 = vector.multi_reduction <maximumf>, %61, %cst_35 [2] : vector<1x8x8xf32> to vector<1x8xf32>
    %63 = vector.shape_cast %62 : vector<1x8xf32> to vector<1x8x1xf32>
    %64 = vector.broadcast %63 : vector<1x8x1xf32> to vector<1x8x8xf32>
    %65 = arith.subf %61, %64 : vector<1x8x8xf32>
    %66 = math.exp %65 : vector<1x8x8xf32>
    %cst_36 = arith.constant dense<0.000000e+00> : vector<1x8xf32>
    %67 = vector.multi_reduction <add>, %66, %cst_36 [2] : vector<1x8x8xf32> to vector<1x8xf32>
    %68 = vector.shape_cast %67 : vector<1x8xf32> to vector<1x8x1xf32>
    %69 = tpu.reciprocal %68 {approx = true} : vector<1x8x1xf32> -> vector<1x8x1xf32>
    %70 = vector.broadcast %69 : vector<1x8x1xf32> to vector<1x8x8xf32>
    %71 = arith.mulf %66, %70 : vector<1x8x8xf32>
    %72 = arith.truncf %71 : vector<1x8x8xf32> to vector<1x8x8xbf16>
    %73 = vector.extract_strided_slice %58 {offsets = [0, 0, 0], sizes = [1, 8, 8], strides = [1, 1, 1]} : vector<1x8x32xbf16> to vector<1x8x8xbf16>
    "tpu.trace_start"() <{level = 10 : i32, message = "bqk,bkd->bqd"}> : () -> ()
    %cst_37 = arith.constant dense<0.000000e+00> : vector<1x8x8xf32>
    %74 = tpu.matmul %72, %73, %cst_37 {dimension_numbers = #tpu.dot_dimension_numbers<[2], [1], [1], [2], [0, 0, 0, 1, 1, 2], [0], [0]>} : vector<1x8x8xbf16>, vector<1x8x8xbf16>, vector<1x8x8xf32> -> vector<1x8x8xf32>
    "tpu.trace_stop"() : () -> ()
    %75 = arith.truncf %74 : vector<1x8x8xf32> to vector<1x8x8xbf16>
    %76 = vector.extract_strided_slice %54 {offsets = [0, 0, 8], sizes = [1, 8, 8], strides = [1, 1, 1]} : vector<1x8x32xbf16> to vector<1x8x8xbf16>
    %77 = vector.extract_strided_slice %56 {offsets = [0, 0, 8], sizes = [1, 8, 8], strides = [1, 1, 1]} : vector<1x8x32xbf16> to vector<1x8x8xbf16>
    "tpu.trace_start"() <{level = 10 : i32, message = "bqd,bkd->bqk"}> : () -> ()
    %cst_38 = arith.constant dense<0.000000e+00> : vector<1x8x8xf32>
    %78 = tpu.matmul %76, %77, %cst_38 {dimension_numbers = #tpu.dot_dimension_numbers<[2], [2], [1], [1], [0, 0, 0, 1, 1, 1], [0], [0]>} : vector<1x8x8xbf16>, vector<1x8x8xbf16>, vector<1x8x8xf32> -> vector<1x8x8xf32>
    "tpu.trace_stop"() : () -> ()
    %cst_39 = arith.constant dense<0xFF800000> : vector<1x8xf32>
    %79 = vector.multi_reduction <maximumf>, %78, %cst_39 [2] : vector<1x8x8xf32> to vector<1x8xf32>
    %80 = vector.shape_cast %79 : vector<1x8xf32> to vector<1x8x1xf32>
    %81 = vector.broadcast %80 : vector<1x8x1xf32> to vector<1x8x8xf32>
    %82 = arith.subf %78, %81 : vector<1x8x8xf32>
    %83 = math.exp %82 : vector<1x8x8xf32>
    %cst_40 = arith.constant dense<0.000000e+00> : vector<1x8xf32>
    %84 = vector.multi_reduction <add>, %83, %cst_40 [2] : vector<1x8x8xf32> to vector<1x8xf32>
    %85 = vector.shape_cast %84 : vector<1x8xf32> to vector<1x8x1xf32>
    %86 = tpu.reciprocal %85 {approx = true} : vector<1x8x1xf32> -> vector<1x8x1xf32>
    %87 = vector.broadcast %86 : vector<1x8x1xf32> to vector<1x8x8xf32>
    %88 = arith.mulf %83, %87 : vector<1x8x8xf32>
    %89 = arith.truncf %88 : vector<1x8x8xf32> to vector<1x8x8xbf16>
    %90 = vector.extract_strided_slice %58 {offsets = [0, 0, 8], sizes = [1, 8, 8], strides = [1, 1, 1]} : vector<1x8x32xbf16> to vector<1x8x8xbf16>
    "tpu.trace_start"() <{level = 10 : i32, message = "bqk,bkd->bqd"}> : () -> ()
    %cst_41 = arith.constant dense<0.000000e+00> : vector<1x8x8xf32>
    %91 = tpu.matmul %89, %90, %cst_41 {dimension_numbers = #tpu.dot_dimension_numbers<[2], [1], [1], [2], [0, 0, 0, 1, 1, 2], [0], [0]>} : vector<1x8x8xbf16>, vector<1x8x8xbf16>, vector<1x8x8xf32> -> vector<1x8x8xf32>
    "tpu.trace_stop"() : () -> ()
    %92 = arith.truncf %91 : vector<1x8x8xf32> to vector<1x8x8xbf16>
    %93 = vector.extract_strided_slice %54 {offsets = [0, 0, 16], sizes = [1, 8, 8], strides = [1, 1, 1]} : vector<1x8x32xbf16> to vector<1x8x8xbf16>
    %94 = vector.extract_strided_slice %56 {offsets = [0, 0, 16], sizes = [1, 8, 8], strides = [1, 1, 1]} : vector<1x8x32xbf16> to vector<1x8x8xbf16>
    "tpu.trace_start"() <{level = 10 : i32, message = "bqd,bkd->bqk"}> : () -> ()
    %cst_42 = arith.constant dense<0.000000e+00> : vector<1x8x8xf32>
    %95 = tpu.matmul %93, %94, %cst_42 {dimension_numbers = #tpu.dot_dimension_numbers<[2], [2], [1], [1], [0, 0, 0, 1, 1, 1], [0], [0]>} : vector<1x8x8xbf16>, vector<1x8x8xbf16>, vector<1x8x8xf32> -> vector<1x8x8xf32>
    "tpu.trace_stop"() : () -> ()
    %cst_43 = arith.constant dense<0xFF800000> : vector<1x8xf32>
    %96 = vector.multi_reduction <maximumf>, %95, %cst_43 [2] : vector<1x8x8xf32> to vector<1x8xf32>
    %97 = vector.shape_cast %96 : vector<1x8xf32> to vector<1x8x1xf32>
    %98 = vector.broadcast %97 : vector<1x8x1xf32> to vector<1x8x8xf32>
    %99 = arith.subf %95, %98 : vector<1x8x8xf32>
    %100 = math.exp %99 : vector<1x8x8xf32>
    %cst_44 = arith.constant dense<0.000000e+00> : vector<1x8xf32>
    %101 = vector.multi_reduction <add>, %100, %cst_44 [2] : vector<1x8x8xf32> to vector<1x8xf32>
    %102 = vector.shape_cast %101 : vector<1x8xf32> to vector<1x8x1xf32>
    %103 = tpu.reciprocal %102 {approx = true} : vector<1x8x1xf32> -> vector<1x8x1xf32>
    %104 = vector.broadcast %103 : vector<1x8x1xf32> to vector<1x8x8xf32>
    %105 = arith.mulf %100, %104 : vector<1x8x8xf32>
    %106 = arith.truncf %105 : vector<1x8x8xf32> to vector<1x8x8xbf16>
    %107 = vector.extract_strided_slice %58 {offsets = [0, 0, 16], sizes = [1, 8, 8], strides = [1, 1, 1]} : vector<1x8x32xbf16> to vector<1x8x8xbf16>
    "tpu.trace_start"() <{level = 10 : i32, message = "bqk,bkd->bqd"}> : () -> ()
    %cst_45 = arith.constant dense<0.000000e+00> : vector<1x8x8xf32>
    %108 = tpu.matmul %106, %107, %cst_45 {dimension_numbers = #tpu.dot_dimension_numbers<[2], [1], [1], [2], [0, 0, 0, 1, 1, 2], [0], [0]>} : vector<1x8x8xbf16>, vector<1x8x8xbf16>, vector<1x8x8xf32> -> vector<1x8x8xf32>
    "tpu.trace_stop"() : () -> ()
    %109 = arith.truncf %108 : vector<1x8x8xf32> to vector<1x8x8xbf16>
    %110 = vector.extract_strided_slice %54 {offsets = [0, 0, 24], sizes = [1, 8, 8], strides = [1, 1, 1]} : vector<1x8x32xbf16> to vector<1x8x8xbf16>
    %111 = vector.extract_strided_slice %56 {offsets = [0, 0, 24], sizes = [1, 8, 8], strides = [1, 1, 1]} : vector<1x8x32xbf16> to vector<1x8x8xbf16>
    "tpu.trace_start"() <{level = 10 : i32, message = "bqd,bkd->bqk"}> : () -> ()
    %cst_46 = arith.constant dense<0.000000e+00> : vector<1x8x8xf32>
    %112 = tpu.matmul %110, %111, %cst_46 {dimension_numbers = #tpu.dot_dimension_numbers<[2], [2], [1], [1], [0, 0, 0, 1, 1, 1], [0], [0]>} : vector<1x8x8xbf16>, vector<1x8x8xbf16>, vector<1x8x8xf32> -> vector<1x8x8xf32>
    "tpu.trace_stop"() : () -> ()
    %cst_47 = arith.constant dense<0xFF800000> : vector<1x8xf32>
    %113 = vector.multi_reduction <maximumf>, %112, %cst_47 [2] : vector<1x8x8xf32> to vector<1x8xf32>
    %114 = vector.shape_cast %113 : vector<1x8xf32> to vector<1x8x1xf32>
    %115 = vector.broadcast %114 : vector<1x8x1xf32> to vector<1x8x8xf32>
    %116 = arith.subf %112, %115 : vector<1x8x8xf32>
    %117 = math.exp %116 : vector<1x8x8xf32>
    %cst_48 = arith.constant dense<0.000000e+00> : vector<1x8xf32>
    %118 = vector.multi_reduction <add>, %117, %cst_48 [2] : vector<1x8x8xf32> to vector<1x8xf32>
    %119 = vector.shape_cast %118 : vector<1x8xf32> to vector<1x8x1xf32>
    %120 = tpu.reciprocal %119 {approx = true} : vector<1x8x1xf32> -> vector<1x8x1xf32>
    %121 = vector.broadcast %120 : vector<1x8x1xf32> to vector<1x8x8xf32>
    %122 = arith.mulf %117, %121 : vector<1x8x8xf32>
    %123 = arith.truncf %122 : vector<1x8x8xf32> to vector<1x8x8xbf16>
    %124 = vector.extract_strided_slice %58 {offsets = [0, 0, 24], sizes = [1, 8, 8], strides = [1, 1, 1]} : vector<1x8x32xbf16> to vector<1x8x8xbf16>
    "tpu.trace_start"() <{level = 10 : i32, message = "bqk,bkd->bqd"}> : () -> ()
    %cst_49 = arith.constant dense<0.000000e+00> : vector<1x8x8xf32>
    %125 = tpu.matmul %123, %124, %cst_49 {dimension_numbers = #tpu.dot_dimension_numbers<[2], [1], [1], [2], [0, 0, 0, 1, 1, 2], [0], [0]>} : vector<1x8x8xbf16>, vector<1x8x8xbf16>, vector<1x8x8xf32> -> vector<1x8x8xf32>
    "tpu.trace_stop"() : () -> ()
    %126 = arith.truncf %125 : vector<1x8x8xf32> to vector<1x8x8xbf16>
    %127 = tpu.concatenate %75, %92, %109, %126 in 2 : vector<1x8x8xbf16>, vector<1x8x8xbf16>, vector<1x8x8xbf16>, vector<1x8x8xbf16> -> vector<1x8x32xbf16>
    %128 = vector.shape_cast %127 : vector<1x8x32xbf16> to vector<8x32xbf16>
    %c0_50 = arith.constant 0 : index
    %c0_51 = arith.constant 0 : index
    %c0_52 = arith.constant 0 : index
    %129 = vector.load %arg11[%c0_50, %c0_51, %c0_52] : memref<1x32x32xbf16, #tpu.memory_space<vmem>>, vector<1x32x32xbf16>
    %130 = vector.shape_cast %129 : vector<1x32x32xbf16> to vector<32x32xbf16>
    %cst_53 = arith.constant dense<0.000000e+00> : vector<8x32xf32>
    %131 = tpu.matmul %128, %130, %cst_53 {dimension_numbers = #tpu.dot_dimension_numbers<[1], [0], [0], [1], [0, 0, 1, 1], [], []>} : vector<8x32xbf16>, vector<32x32xbf16>, vector<8x32xf32> -> vector<8x32xf32>
    %132 = arith.addf %4, %131 : vector<8x32xf32>
    %c0_54 = arith.constant 0 : index
    %c0_55 = arith.constant 0 : index
    %c0_56 = arith.constant 0 : index
    %133 = vector.load %arg12[%c0_54, %c0_55, %c0_56] : memref<1x1x32xf32, #tpu.memory_space<vmem>>, vector<1x1x32xf32>
    %134 = vector.shape_cast %133 : vector<1x1x32xf32> to vector<1x32xf32>
    %135 = vector.broadcast %134 : vector<1x32xf32> to vector<8x32xf32>
    %136 = arith.addf %132, %135 : vector<8x32xf32>
    %c0_57 = arith.constant 0 : index
    %c0_58 = arith.constant 0 : index
    %c0_59 = arith.constant 0 : index
    %137 = vector.load %arg13[%c0_57, %c0_58, %c0_59] : memref<1x1x32xf32, #tpu.memory_space<vmem>>, vector<1x1x32xf32>
    %138 = vector.shape_cast %137 : vector<1x1x32xf32> to vector<1x32xf32>
    %c0_60 = arith.constant 0 : index
    %c0_61 = arith.constant 0 : index
    %c0_62 = arith.constant 0 : index
    %139 = vector.load %arg14[%c0_60, %c0_61, %c0_62] : memref<1x1x32xf32, #tpu.memory_space<vmem>>, vector<1x1x32xf32>
    %140 = vector.shape_cast %139 : vector<1x1x32xf32> to vector<1x32xf32>
    %cst_63 = arith.constant dense<0.000000e+00> : vector<8xf32>
    %141 = vector.multi_reduction <add>, %136, %cst_63 [1] : vector<8x32xf32> to vector<8xf32>
    %142 = vector.shape_cast %141 : vector<8xf32> to vector<8x1xf32>
    %cst_64 = arith.constant 3.200000e+01 : f32
    %143 = vector.broadcast %cst_64 : f32 to vector<8x1xf32>
    %144 = arith.divf %142, %143 : vector<8x1xf32>
    %145 = vector.broadcast %144 : vector<8x1xf32> to vector<8x32xf32>
    %146 = arith.subf %136, %145 : vector<8x32xf32>
    %147 = arith.mulf %146, %146 : vector<8x32xf32>
    %cst_65 = arith.constant dense<0.000000e+00> : vector<8xf32>
    %148 = vector.multi_reduction <add>, %147, %cst_65 [1] : vector<8x32xf32> to vector<8xf32>
    %149 = vector.shape_cast %148 : vector<8xf32> to vector<8x1xf32>
    %cst_66 = arith.constant 3.200000e+01 : f32
    %150 = vector.broadcast %cst_66 : f32 to vector<8x1xf32>
    %151 = arith.divf %149, %150 : vector<8x1xf32>
    %152 = vector.broadcast %144 : vector<8x1xf32> to vector<8x32xf32>
    %153 = arith.subf %136, %152 : vector<8x32xf32>
    %cst_67 = arith.constant 9.99999974E-6 : f32
    %154 = vector.broadcast %cst_67 : f32 to vector<8x1xf32>
    %155 = arith.addf %151, %154 : vector<8x1xf32>
    %156 = math.rsqrt %155 : vector<8x1xf32>
    %157 = vector.broadcast %156 : vector<8x1xf32> to vector<8x32xf32>
    %158 = arith.mulf %153, %157 : vector<8x32xf32>
    %159 = vector.broadcast %138 : vector<1x32xf32> to vector<8x32xf32>
    %160 = arith.mulf %158, %159 : vector<8x32xf32>
    %161 = vector.broadcast %140 : vector<1x32xf32> to vector<8x32xf32>
    %162 = arith.addf %160, %161 : vector<8x32xf32>
    %163 = arith.truncf %162 : vector<8x32xf32> to vector<8x32xbf16>
    %c0_68 = arith.constant 0 : index
    %c0_69 = arith.constant 0 : index
    %c0_70 = arith.constant 0 : index
    %164 = vector.load %arg15[%c0_68, %c0_69, %c0_70] : memref<1x32x128xbf16, #tpu.memory_space<vmem>>, vector<1x32x128xbf16>
    %165 = vector.shape_cast %164 : vector<1x32x128xbf16> to vector<32x128xbf16>
    %cst_71 = arith.constant dense<0.000000e+00> : vector<8x128xf32>
    %166 = tpu.matmul %163, %165, %cst_71 {dimension_numbers = #tpu.dot_dimension_numbers<[1], [0], [0], [1], [0, 0, 1, 1], [], []>} : vector<8x32xbf16>, vector<32x128xbf16>, vector<8x128xf32> -> vector<8x128xf32>
    %c0_72 = arith.constant 0 : index
    %c0_73 = arith.constant 0 : index
    %c0_74 = arith.constant 0 : index
    %167 = vector.load %arg16[%c0_72, %c0_73, %c0_74] : memref<1x1x128xf32, #tpu.memory_space<vmem>>, vector<1x1x128xf32>
    %168 = vector.shape_cast %167 : vector<1x1x128xf32> to vector<1x128xf32>
    %169 = vector.broadcast %168 : vector<1x128xf32> to vector<8x128xf32>
    %170 = arith.addf %166, %169 : vector<8x128xf32>
    %cst_75 = arith.constant 5.000000e-01 : f32
    %171 = vector.broadcast %cst_75 : f32 to vector<8x128xf32>
    %172 = arith.mulf %171, %170 : vector<8x128xf32>
    %cst_76 = arith.constant 0.707106769 : f32
    %173 = vector.broadcast %cst_76 : f32 to vector<8x128xf32>
    %174 = arith.mulf %170, %173 : vector<8x128xf32>
    %cst_77 = arith.constant 0.000000e+00 : f32
    %175 = vector.broadcast %cst_77 : f32 to vector<8x128xf32>
    %176 = arith.cmpf oge, %174, %175 : vector<8x128xf32>
    %cst_78 = arith.constant 1.000000e+00 : f32
    %cst_79 = arith.constant -1.000000e+00 : f32
    %177 = vector.broadcast %cst_78 : f32 to vector<8x128xf32>
    %178 = vector.broadcast %cst_79 : f32 to vector<8x128xf32>
    %179 = arith.select %176, %177, %178 : vector<8x128xi1>, vector<8x128xf32>
    %180 = math.absf %174 : vector<8x128xf32>
    %cst_80 = arith.constant 0.327591091 : f32
    %181 = vector.broadcast %cst_80 : f32 to vector<8x128xf32>
    %182 = arith.mulf %181, %180 : vector<8x128xf32>
    %cst_81 = arith.constant 1.000000e+00 : f32
    %183 = vector.broadcast %cst_81 : f32 to vector<8x128xf32>
    %184 = arith.addf %183, %182 : vector<8x128xf32>
    %185 = tpu.reciprocal %184 {approx = true} : vector<8x128xf32> -> vector<8x128xf32>
    %cst_82 = arith.constant 1.06140542 : f32
    %186 = vector.broadcast %cst_82 : f32 to vector<8x128xf32>
    %187 = arith.mulf %186, %185 : vector<8x128xf32>
    %cst_83 = arith.constant -1.45315206 : f32
    %188 = vector.broadcast %cst_83 : f32 to vector<8x128xf32>
    %189 = arith.addf %187, %188 : vector<8x128xf32>
    %190 = arith.mulf %189, %185 : vector<8x128xf32>
    %cst_84 = arith.constant 1.42141378 : f32
    %191 = vector.broadcast %cst_84 : f32 to vector<8x128xf32>
    %192 = arith.addf %190, %191 : vector<8x128xf32>
    %193 = arith.mulf %192, %185 : vector<8x128xf32>
    %cst_85 = arith.constant -0.284496725 : f32
    %194 = vector.broadcast %cst_85 : f32 to vector<8x128xf32>
    %195 = arith.addf %193, %194 : vector<8x128xf32>
    %196 = arith.mulf %195, %185 : vector<8x128xf32>
    %cst_86 = arith.constant 0.254829586 : f32
    %197 = vector.broadcast %cst_86 : f32 to vector<8x128xf32>
    %198 = arith.addf %196, %197 : vector<8x128xf32>
    %199 = arith.mulf %198, %185 : vector<8x128xf32>
    %cst_87 = arith.constant 0.000000e+00 : f32
    %200 = vector.broadcast %cst_87 : f32 to vector<8x128xf32>
    %201 = arith.subf %200, %180 : vector<8x128xf32>
    %202 = arith.mulf %201, %180 : vector<8x128xf32>
    %203 = math.exp %202 : vector<8x128xf32>
    %204 = arith.mulf %199, %203 : vector<8x128xf32>
    %cst_88 = arith.constant 1.000000e+00 : f32
    %205 = vector.broadcast %cst_88 : f32 to vector<8x128xf32>
    %206 = arith.subf %205, %204 : vector<8x128xf32>
    %207 = arith.mulf %179, %206 : vector<8x128xf32>
    %cst_89 = arith.constant 1.000000e+00 : f32
    %208 = vector.broadcast %cst_89 : f32 to vector<8x128xf32>
    %209 = arith.addf %208, %207 : vector<8x128xf32>
    %210 = arith.mulf %172, %209 : vector<8x128xf32>
    %211 = arith.truncf %210 : vector<8x128xf32> to vector<8x128xbf16>
    %c0_90 = arith.constant 0 : index
    %c0_91 = arith.constant 0 : index
    %c0_92 = arith.constant 0 : index
    %212 = vector.load %arg17[%c0_90, %c0_91, %c0_92] : memref<1x128x32xbf16, #tpu.memory_space<vmem>>, vector<1x128x32xbf16>
    %213 = vector.shape_cast %212 : vector<1x128x32xbf16> to vector<128x32xbf16>
    %cst_93 = arith.constant dense<0.000000e+00> : vector<8x32xf32>
    %214 = tpu.matmul %211, %213, %cst_93 {dimension_numbers = #tpu.dot_dimension_numbers<[1], [0], [0], [1], [0, 0, 1, 1], [], []>} : vector<8x128xbf16>, vector<128x32xbf16>, vector<8x32xf32> -> vector<8x32xf32>
    %c0_94 = arith.constant 0 : index
    %c0_95 = arith.constant 0 : index
    %c0_96 = arith.constant 0 : index
    %215 = vector.load %arg18[%c0_94, %c0_95, %c0_96] : memref<1x1x32xf32, #tpu.memory_space<vmem>>, vector<1x1x32xf32>
    %216 = vector.shape_cast %215 : vector<1x1x32xf32> to vector<1x32xf32>
    %217 = vector.broadcast %216 : vector<1x32xf32> to vector<8x32xf32>
    %218 = arith.addf %214, %217 : vector<8x32xf32>
    %219 = arith.addf %136, %218 : vector<8x32xf32>
    %220 = vector.shape_cast %219 : vector<8x32xf32> to vector<1x8x32xf32>
    %c0_97 = arith.constant 0 : index
    %c0_98 = arith.constant 0 : index
    %c0_99 = arith.constant 0 : index
    %221 = vector.load %arg19[%c0_97, %c0_98, %c0_99] : memref<1x8x32xf32, #tpu.memory_space<vmem>>, vector<1x8x32xf32>
    tpu.vector_store %arg19[%c0_97, %c0_98, %c0_99], %220 {strides = array<i32>} : memref<1x8x32xf32, #tpu.memory_space<vmem>>, vector<1x8x32xf32>,
    return
  }
  func.func @transform_0(%arg0: i32, %arg1: i32) -> (i32, i32, i32) {
    %c0_i32 = arith.constant 0 : i32
    %c0_i32_0 = arith.constant 0 : i32
    %c0_i32_1 = arith.constant 0 : i32
    return %arg0, %c0_i32, %c0_i32_0 : i32, i32, i32
  }
  func.func @transform_1(%arg0: i32, %arg1: i32) -> (i32, i32, i32) {
    %c0_i32 = arith.constant 0 : i32
    %c0_i32_0 = arith.constant 0 : i32
    %c0_i32_1 = arith.constant 0 : i32
    return %arg1, %c0_i32, %c0_i32_0 : i32, i32, i32
  }
  func.func @transform_2(%arg0: i32, %arg1: i32) -> (i32, i32, i32) {
    %c0_i32 = arith.constant 0 : i32
    %c0_i32_0 = arith.constant 0 : i32
    %c0_i32_1 = arith.constant 0 : i32
    return %arg1, %c0_i32, %c0_i32_0 : i32, i32, i32
  }
  func.func @transform_3(%arg0: i32, %arg1: i32) -> (i32, i32, i32) {
    %c0_i32 = arith.constant 0 : i32
    %c0_i32_0 = arith.constant 0 : i32
    %c0_i32_1 = arith.constant 0 : i32
    return %arg1, %c0_i32, %c0_i32_0 : i32, i32, i32
  }
  func.func @transform_4(%arg0: i32, %arg1: i32) -> (i32, i32, i32) {
    %c0_i32 = arith.constant 0 : i32
    %c0_i32_0 = arith.constant 0 : i32
    %c0_i32_1 = arith.constant 0 : i32
    return %arg1, %c0_i32, %c0_i32_0 : i32, i32, i32
  }
  func.func @transform_5(%arg0: i32, %arg1: i32) -> (i32, i32, i32) {
    %c0_i32 = arith.constant 0 : i32
    %c0_i32_0 = arith.constant 0 : i32
    %c0_i32_1 = arith.constant 0 : i32
    return %arg1, %c0_i32, %c0_i32_0 : i32, i32, i32
  }
  func.func @transform_6(%arg0: i32, %arg1: i32) -> (i32, i32, i32) {
    %c0_i32 = arith.constant 0 : i32
    %c0_i32_0 = arith.constant 0 : i32
    %c0_i32_1 = arith.constant 0 : i32
    return %arg1, %c0_i32, %c0_i32_0 : i32, i32, i32
  }
  func.func @transform_7(%arg0: i32, %arg1: i32) -> (i32, i32, i32) {
    %c0_i32 = arith.constant 0 : i32
    %c0_i32_0 = arith.constant 0 : i32
    %c0_i32_1 = arith.constant 0 : i32
    return %arg1, %c0_i32, %c0_i32_0 : i32, i32, i32
  }
  func.func @transform_8(%arg0: i32, %arg1: i32) -> (i32, i32, i32) {
    %c0_i32 = arith.constant 0 : i32
    %c0_i32_0 = arith.constant 0 : i32
    %c0_i32_1 = arith.constant 0 : i32
    return %arg1, %c0_i32, %c0_i32_0 : i32, i32, i32
  }
  func.func @transform_9(%arg0: i32, %arg1: i32) -> (i32, i32, i32) {
    %c0_i32 = arith.constant 0 : i32
    %c0_i32_0 = arith.constant 0 : i32
    %c0_i32_1 = arith.constant 0 : i32
    return %arg1, %c0_i32, %c0_i32_0 : i32, i32, i32
  }
  func.func @transform_10(%arg0: i32, %arg1: i32) -> (i32, i32, i32) {
    %c0_i32 = arith.constant 0 : i32
    %c0_i32_0 = arith.constant 0 : i32
    %c0_i32_1 = arith.constant 0 : i32
    return %arg1, %c0_i32, %c0_i32_0 : i32, i32, i32
  }
  func.func @transform_11(%arg0: i32, %arg1: i32) -> (i32, i32, i32) {
    %c0_i32 = arith.constant 0 : i32
    %c0_i32_0 = arith.constant 0 : i32
    %c0_i32_1 = arith.constant 0 : i32
    return %arg1, %c0_i32, %c0_i32_0 : i32, i32, i32
  }
  func.func @transform_12(%arg0: i32, %arg1: i32) -> (i32, i32, i32) {
    %c0_i32 = arith.constant 0 : i32
    %c0_i32_0 = arith.constant 0 : i32
    %c0_i32_1 = arith.constant 0 : i32
    return %arg1, %c0_i32, %c0_i32_0 : i32, i32, i32
  }
  func.func @transform_13(%arg0: i32, %arg1: i32) -> (i32, i32, i32) {
    %c0_i32 = arith.constant 0 : i32
    %c0_i32_0 = arith.constant 0 : i32
    %c0_i32_1 = arith.constant 0 : i32
    return %arg1, %c0_i32, %c0_i32_0 : i32, i32, i32
  }
  func.func @transform_14(%arg0: i32, %arg1: i32) -> (i32, i32, i32) {
    %c0_i32 = arith.constant 0 : i32
    %c0_i32_0 = arith.constant 0 : i32
    %c0_i32_1 = arith.constant 0 : i32
    return %arg1, %c0_i32, %c0_i32_0 : i32, i32, i32
  }
  func.func @transform_15(%arg0: i32, %arg1: i32) -> (i32, i32, i32) {
    %c0_i32 = arith.constant 0 : i32
    %c0_i32_0 = arith.constant 0 : i32
    %c0_i32_1 = arith.constant 0 : i32
    return %arg1, %c0_i32, %c0_i32_0 : i32, i32, i32
  }
  func.func @transform_16(%arg0: i32, %arg1: i32) -> (i32, i32, i32) {
    %c0_i32 = arith.constant 0 : i32
    %c0_i32_0 = arith.constant 0 : i32
    %c0_i32_1 = arith.constant 0 : i32
    return %arg1, %c0_i32, %c0_i32_0 : i32, i32, i32
  }
  func.func @transform_17(%arg0: i32, %arg1: i32) -> (i32, i32, i32) {
    %c0_i32 = arith.constant 0 : i32
    %c0_i32_0 = arith.constant 0 : i32
    %c0_i32_1 = arith.constant 0 : i32
    return %arg0, %c0_i32, %c0_i32_0 : i32, i32, i32
  }
}

</mosaic_0001>

<bundles_post_ra>
// kernel: tpu_custom_call.1
= control target key start
LH: loop header
LB: loop body
LE: loop exit
PB: predicated region body
PF: predicated region fallthrough
CT: control target
= control target key end

     0   :  { %s4695_s0 = inlined_call_operand.hbm [shape: f32[2,8,32], index: 0, kind: input, shape index: {}]   ;;  %s4696_s1 = inlined_call_operand.hbm [shape: f32[2,1,32], index: 1, kind: input, shape index: {}]   ;;  %s4697_s2 = inlined_call_operand.hbm [shape: f32[2,1,32], index: 2, kind: input, shape index: {}]   ;;  %s4698_s3 = inlined_call_operand.hbm [shape: bf16[2,32,32], index: 3, kind: input, shape index: {}]   ;;  %s4699_s4 = inlined_call_operand.hbm [shape: f32[2,1,32], index: 4, kind: input, shape index: {}]   ;;  %s4700_s5 = inlined_call_operand.hbm [shape: bf16[2,32,32], index: 5, kind: input, shape index: {}]   ;;  %s4701_s6 = inlined_call_operand.hbm [shape: f32[2,1,32], index: 6, kind: input, shape index: {}]   ;;  %s4702_s7 = inlined_call_operand.hbm [shape: bf16[2,32,32], index: 7, kind: input, shape index: {}]   ;;  %s4703_s8 = inlined_call_operand.hbm [shape: f32[2,1,32], index: 8, kind: input, shape index: {}]   ;;  %s4704_s9 = inlined_call_operand.hbm [shape: bf16[2,32,32], index: 9, kind: input, shape index: {}]   ;;  %s4705_s10 = inlined_call_operand.hbm [shape: f32[2,1,32], index: 10, kind: input, shape index: {}]   ;;  %s4706_s11 = inlined_call_operand.hbm [shape: f32[2,1,32], index: 11, kind: input, shape index: {}]   ;;  %s4707_s12 = inlined_call_operand.hbm [shape: f32[2,1,32], index: 12, kind: input, shape index: {}]   ;;  %s4708_s13 = inlined_call_operand.hbm [shape: bf16[2,32,128], index: 13, kind: input, shape index: {}]   ;;  %s4709_s14 = inlined_call_operand.hbm [shape: f32[2,1,128], index: 14, kind: input, shape index: {}]   ;;  %s4710_s15 = inlined_call_operand.hbm [shape: bf16[2,128,32], index: 15, kind: input, shape index: {}]   ;;  %s4711_s16 = inlined_call_operand.hbm [shape: f32[2,1,32], index: 16, kind: input, shape index: {}]   ;;  %s4712_s17 = inlined_call_operand.hbm [shape: f32[2,8,32], index: 17, kind: output, shape index: {}]  }
   0x1   :  { %4753 = sst [smem:[#allocation55_spill]] %s4695_s0 }
   0x2   :  { %4754 = sst [smem:[#allocation56_spill]] %s4696_s1 }
   0x3   :  { %4755 = sst [smem:[#allocation57_spill]] %s4697_s2 }
   0x4   :  { %4756 = sst [smem:[#allocation58_spill]] %s4698_s3 }
   0x5   :  { %4757 = sst [smem:[#allocation59_spill]] %s4700_s5 }
   0x6   :  { %4758 = sst [smem:[#allocation60_spill]] %s4701_s6 }
   0x7   :  { %4759 = sst [smem:[#allocation61_spill]] %s4702_s7 }
   0x8   :  { %4760 = sst [smem:[#allocation62_spill]] %s4703_s8 }
   0x9   :  { %4761 = sst [smem:[#allocation63_spill]] %s4705_s10 }
   0xa   :  { %4762 = sst [smem:[#allocation64_spill]] %s4707_s12 }
   0xb   :  { %4763 = sst [smem:[#allocation65_spill]] %s4709_s14 }
   0xc   :  { %4764 = sst [smem:[#allocation66_spill]] %s4711_s16 }
   0xd   :  { %4765 = sst [smem:[#allocation67_spill]] %s4712_s17 }
   0xe   :  { %22 = vsyncpa [#allocation3], 0 }
   0xf   :  { %24 = vsyncpa [#allocation3 + $0x1], 0 }
  0x10   :  { %25 = vsyncpa [#allocation6], 0 }
  0x11   :  { %27 = vsyncpa [#allocation6 + $0x1], 0 }
  0x12   :  { %28 = vsyncpa [#allocation9], 0 }
  0x13   :  { %30 = vsyncpa [#allocation9 + $0x1], 0 }
  0x14   :  { %31 = vsyncpa [#allocation12], 0 }
  0x15   :  { %33 = vsyncpa [#allocation12 + $0x1], 0 }
  0x16   :  { %34 = vsyncpa [#allocation15], 0 }
  0x17   :  { %36 = vsyncpa [#allocation15 + $0x1], 0 }
  0x18   :  { %37 = vsyncpa [#allocation18], 0 }
  0x19   :  { %39 = vsyncpa [#allocation18 + $0x1], 0 }
  0x1a   :  { %40 = vsyncpa [#allocation21], 0 }
  0x1b   :  { %42 = vsyncpa [#allocation21 + $0x1], 0 }
  0x1c   :  { %43 = vsyncpa [#allocation24], 0 }
  0x1d   :  { %45 = vsyncpa [#allocation24 + $0x1], 0 }
  0x1e   :  { %46 = vsyncpa [#allocation27], 0 }
  0x1f   :  { %48 = vsyncpa [#allocation27 + $0x1], 0 }
  0x20   :  { %49 = vsyncpa [#allocation4], 0 }
  0x21   :  { %51 = vsyncpa [#allocation4 + $0x1], 0  ;;  %s3717_s24 = smov 0   ;;  %s3719_s25 = smov 0  }
  0x22   :  { %s3721_s26 = smov 0   ;;  %s3723_s27 = smov 0  }
  0x23   :  { %s3725_s28 = smov 0   ;;  %s3727_s29 = smov 0  }
  0x24   :  { %s3729_s0 = smov 0   ;;  %s3731_s30 = smov 0  }
  0x25   :  { %s3733_s18 = smov 0   ;;  %s3735_s19 = smov 0  }
  0x26   :  { %s3737_s1 = smov 0  }
  0x27 LB: > { %4766 = sst [smem:[#allocation40_spill]] %s3560_s25  ;;  %s3773_s20 = sadd.s32 4294967295, %s3596_s1   ;;  %s3596_s1 = sphi %s3737_s1, %s57_s1   ;;  %s3592_s19 = sphi %s3735_s19, %s4858_s19   ;;  %s3588_s18 = sphi %s3733_s18, %s4857_s18   ;;  %s3584_s30 = sphi %s3731_s30, %s4856_s30   ;;  %s3580_s0 = sphi %s3729_s0, %s4855_s0   ;;  %s3576_s29 = sphi %s3727_s29, %s4854_s29   ;;  %s3572_s28 = sphi %s3725_s28, %s4853_s28   ;;  %s3568_s27 = sphi %s3723_s27, %s4849_s27   ;;  %s3564_s26 = sphi %s3721_s26, %s4848_s26   ;;  %s3560_s25 = sphi %s3719_s25, %s4847_s25   ;;  %s3556_s24 = sphi %s3717_s24, %s4846_s24  }
  0x28   : > { %4767 = sst [smem:[#allocation41_spill]] %s3564_s26  ;;  %s2542_s21 = sadd.s32 4294967294, %s3596_s1  }
  0x29   : > { %4768 = sst [smem:[#allocation42_spill]] %s3568_s27  ;;  %s66_s22 = sadd.s32 1, %s3588_s18 }
  0x2a   : > { %4769 = sst [smem:[#allocation43_spill]] %s3572_s28  ;;  %s69_s23 = sadd.s32 1, %s3592_s19 }
  0x2b   : > { %4770 = sst [smem:[#allocation44_spill]] %s3580_s0  ;;  %p67_p0 = scmp.ge.s32.totalorder %s66_s22, 2 }
  0x2c   : > { %4771 = sst [smem:[#allocation45_spill]] %s3584_s30  ;;  %s76_s17 = sadd.s32 1, %s3576_s29 }
  0x2d   : > { %4772 = sst [smem:[#allocation46_spill]] %s3773_s20  ;;  %p83_p1 = scmp.ne.s32.totalorder %s3576_s29, %s3572_s28 }
  0x2e   : > { %p84_p2 = scmp.eq.s32.totalorder %s3596_s1, 0  ;;  %s4860_s22 = smov (%p67_p0, %s66_s22), 0 }
  0x2f   : > { %4773 = sst [smem:[#allocation47_spill]] %s4860_s22  ;;  %s4862_s23 = smov (!%p67_p0, %s69_s23), %s3592_s19 }
  0x30   : > { %p3790_p3 = por %p84_p2, %p83_p1  ;;  %p4723_p4 = scmp.ne.s32.totalorder %s3572_s28, %s3568_s27 }
  0x31   : > { %p71_p5 = scmp.ge.s32.totalorder %s4862_s23, 2  ;;  %p90_p6 = scmp.eq.s32.totalorder %s3773_s20, 0 }
  0x32   : > { %s4774_s30 = scalar_select %p3790_p3, 1, 0 }
  0x33   : > { %s99_s0 = ssub.s32 %s3588_s18, %s4860_s22  ;;  %s102_s16 = sadd.s32 1, %s3564_s26 }
  0x34   : > { %s4864_s23 = smov (%p71_p5, %s4862_s23), 0  ;;  %p3807_p7 = por %p90_p6, %p4723_p4 }
  0x35   : > { %4775 = sst [smem:[#allocation48_spill]] %s4864_s23  ;;  %p100_p8 = scmp.eq.s32.totalorder %s99_s0, 0 }
  0x36   : > { %s4776_s14 = scalar_select %p3807_p7, 1, 0 }
  0x37   : > { %s73_s12 = ssub.s32 %s3592_s19, %s4864_s23  ;;  %p109_p9 = scmp.ne.s32.totalorder %s3564_s26, %s3560_s25 }
  0x38   : > { %4777 = sst [smem:[#allocation49_spill]] %s4776_s14  ;;  %p74_p10 = scmp.eq.s32.totalorder %s73_s12, 0 }
  0x39   : > { %p115_p11 = scmp.ne.s32.totalorder %s3560_s25, %s3556_s24  ;;  %p3825_p12 = por %p109_p9, %p84_p2 }
  0x3a   : > { %s3818_s10 = scalar_select %p100_p8, %s3564_s26, %s102_s16  }
  0x3b   : > { %s3821_s22 = scalar_select %p74_p10, %s3576_s29, %s76_s17  }
  0x3c   : > { %4778 = sst [smem:[#allocation50_spill]] %s3818_s10  ;;  %p3831_p13 = por %p115_p11, %p90_p6 }
  0x3d   : > { %4779 = sst [smem:[#allocation51_spill]] %s3821_s22  ;;  %p529_p0 = scmp.eq.s32.totalorder %s3773_s20, 3 }
  0x3e   : > { %s4780_s8 = scalar_select %p3825_p12, 1, 0 }
  0x3f   : > { %s4781_s6 = scalar_select %p3831_p13, 1, 0 }
  0x40   : > { %p535_p5 = scmp.eq.s32.totalorder %s2542_s21, 3  ;;  %p3839_p4 = por %p529_p0, %p83_p1 }
  0x41   : > { %4782 = sst [smem:[#allocation52_spill]] %s4781_s6  ;;  %p4785_p8 = scmp.ne.s32.totalorder %s3572_s28, %s3568_s27 }
  0x42   : > { %s4783_s12 = scalar_select %p3839_p4, 1, 0 }
  0x43   : > { %p3846_p10 = por %p535_p5, %p4785_p8  ;;  %p2544_p2 = scmp.ge.s32.totalorder %s3596_s1, 4 }
  0x44   : > { %4784 = sst [smem:[#allocation53_spill]] %s4783_s12  ;;  %s3852_s17 = sand.u32 (!%p2544_p2), 1, %s3596_s1  }
  0x45   : > { %s4786_s16 = scalar_select %p3846_p10, 1, 0 }
  0x46   : > { %551 = sbr.rel (%p2544_p2) target bundleno = 530 (0x212), region = 16  ;;  %s3855_s24 = sand.u32 (!%p2544_p2), 1, %s3564_s26  }
  0x47   : > { %4787 = sst [smem:[#allocation54_spill]] %s4786_s16  ;;  %s3858_s0 = sshll.u32 (!%p2544_p2), %s3588_s18, 4 }
  0x48   : > { %s576_s21 = scalar_lea.vmem (!%p2544_p2), [#allocation5], %s3855_s24  ;;  %s4788_s16 = sld [smem:[#allocation56_spill]] (!%p2544_p2) }
  0x49   : > { %s583_s23 = sshll.u32 (!%p2544_p2), %s576_s21, 4  ;;  %s584_s23 = int_to_ptr.vmem [resolvable:$true] %s583_s23 }
  0x4e   : > { %s3865_s27 = scalar_lea.hbm %s4788_s16, %s3858_s0  ;;  %s2970_s21 = scalar_lea.hbm %s4788_s16, 32 }
  0x4f   : > { %s2966_s6 = scalar_lea.hbm %s3865_s27, 16  ;;  %p2971_p11 = scmp.lt.u32.totalorder %s3865_s27, %s4788_s16 }
  0x50   : > { %p2967_p1 = scmp.ne.s32.totalorder %s3865_s27, %s2966_s6  ;;  %p2972_p0 = scmp.lt.u32.totalorder %s2970_s21, %s2966_s6 }
  0x51   : > { %p2974_p8 = scmp.lt.u32.totalorder %s2966_s6, %s3865_s27 }
  0x52   : > { %p2968_p6 = pnand %p2967_p1, %p3825_p12  ;;  %p2973_p5 = por %p2972_p0, %p2971_p11 }
  0x54   : > { %p2969_p9 = pneg %p2968_p6  ;;  %p2975_p2 = por %p2974_p8, %p2973_p5 }
  0x56   : > { %p2976_p10 = pnand %p2975_p2, %p2969_p9 }
  0x58   : > { %2979 = shalt.err (!%p2976_p10)
}
  0x59   : > { %s2980_s10 = scalar_lea.vmem %s584_s23, 16  ;;  %s3598_s22 = smov [#allocation5]  }
  0x5a   : > { %p2981_p4 = scmp.ne.s32.totalorder %s584_s23, %s2980_s10  ;;  %s2984_s12 = sshll.u32 %s3598_s22, 4  ;;  %s2985_s12 = int_to_ptr.vmem [resolvable:$false] %s2984_s12 }
  0x5b   : > { %s2986_s25 = scalar_lea.vmem %s2985_s12, 32  ;;  %p2987_p13 = scmp.lt.s32.totalorder %s584_s23, %s2985_s12 }
  0x5c   : > { %p2982_p1 = pnand %p2981_p4, %p3825_p12  ;;  %p2988_p7 = scmp.lt.s32.totalorder %s2986_s25, %s2980_s10 }
  0x5e   : > { %p2983_p6 = pneg %p2982_p1  ;;  %p2989_p3 = por %p2988_p7, %p2987_p13 }
  0x60   : > { %p2990_p0 = pnand %p2989_p3, %p2983_p6 }
  0x62   : > { %2993 = shalt.err (!%p2990_p0)
}
  0x63   : > { %s4789_s6 = scalar_lea.sflag [#allocation6], %s3852_s17  ;;  %s3888_s14 = sshll.u32 %s3855_s24, 4 }
  0x64   : > { %2785 = dma.hbm_to_vmem [thread:$0]  (%p3825_p12), %s3865_s27, 16, %s584_s23, %s4789_s6  }
  0x65   : > { %s3891_s26 = sshll.u32 %s3588_s18, 8  ;;  %s4790_s3 = sld [smem:[#allocation58_spill]] }
  0x66   : > { %s611_s10 = scalar_lea.vmem [#allocation8], %s3888_s14  ;;  %s4742_s27 = scalar_lea.sflag [#allocation9], %s3852_s17 }
  0x67   : > { %s618_s22 = sshll.u32 %s611_s10, 4  ;;  %s3900_s22 = int_to_ptr.vmem [resolvable:$true] %s618_s22 }
  0x6b   : > { %s3897_s21 = scalar_lea.hbm %s4790_s3, %s3891_s26  ;;  %s2998_s20 = scalar_lea.hbm %s4790_s3, 512 }
  0x6c   : > { %s2994_s23 = scalar_lea.hbm %s3897_s21, 256  ;;  %p2999_p13 = scmp.lt.u32.totalorder %s3897_s21, %s4790_s3 }
  0x6d   : > { %p2995_p3 = scmp.ne.s32.totalorder %s3897_s21, %s2994_s23  ;;  %p3000_p10 = scmp.lt.u32.totalorder %s2998_s20, %s2994_s23 }
  0x6e   : > { %p3002_p11 = scmp.lt.u32.totalorder %s2994_s23, %s3897_s21 }
  0x6f   : > { %p2996_p4 = pnand %p2995_p3, %p3825_p12  ;;  %p3001_p9 = por %p3000_p10, %p2999_p13 }
  0x71   : > { %p2997_p7 = pneg %p2996_p4  ;;  %p3003_p5 = por %p3002_p11, %p3001_p9 }
  0x73   : > { %p3004_p8 = pnand %p3003_p5, %p2997_p7 }
  0x75   : > { %3007 = shalt.err (!%p3004_p8)
}
  0x76   : > { %s3008_s10 = scalar_lea.vmem %s3900_s22, 256  ;;  %s3599_s25 = smov [#allocation8]  }
  0x77   : > { %p3009_p2 = scmp.ne.s32.totalorder %s3900_s22, %s3008_s10  ;;  %s3012_s6 = sshll.u32 %s3599_s25, 4  ;;  %s3013_s6 = int_to_ptr.vmem [resolvable:$false] %s3012_s6 }
  0x78   : > { %s3014_s16 = scalar_lea.vmem %s3013_s6, 512  ;;  %p3015_p0 = scmp.lt.s32.totalorder %s3900_s22, %s3013_s6 }
  0x79   : > { %p3010_p1 = pnand %p3009_p2, %p3825_p12  ;;  %p3016_p3 = scmp.lt.s32.totalorder %s3014_s16, %s3008_s10 }
  0x7b   : > { %p3011_p6 = pneg %p3010_p1  ;;  %p3017_p4 = por %p3016_p3, %p3015_p0 }
  0x7d   : > { %p3018_p13 = pnand %p3017_p4, %p3011_p6 }
  0x7f   : > { %3021 = shalt.err (!%p3018_p13)
}
  0x80   : > { %s4746_s23 = smov 64   ;;  %s3601_s20 = smov 4  }
  0x81   : > { %2787 = dma.hbm_to_vmem [thread:$0]  (%p3825_p12), %s3897_s21, 256, %s3900_s22, %s4742_s27, %s4746_s23, %s4746_s23, %s3601_s20  }
  0x82   : > { %s4791_s5 = sld [smem:[#allocation59_spill]]  ;;  %s649_s6 = scalar_lea.vmem [#allocation11], %s3888_s14 }
  0x83   : > { %s656_s16 = sshll.u32 %s649_s6, 4  ;;  %s4743_s3 = scalar_lea.sflag [#allocation12], %s3852_s17  ;;  %s3936_s16 = int_to_ptr.vmem [resolvable:$true] %s656_s16 }
  0x88   : > { %s3933_s25 = scalar_lea.hbm %s4791_s5, %s3891_s26  ;;  %s3026_s12 = scalar_lea.hbm %s4791_s5, 512 }
  0x89   : > { %s3022_s28 = scalar_lea.hbm %s3933_s25, 256  ;;  %p3027_p11 = scmp.lt.u32.totalorder %s3933_s25, %s4791_s5 }
  0x8a   : > { %p3023_p7 = scmp.ne.s32.totalorder %s3933_s25, %s3022_s28  ;;  %p3028_p5 = scmp.lt.u32.totalorder %s3026_s12, %s3022_s28 }
  0x8b   : > { %p3030_p2 = scmp.lt.u32.totalorder %s3022_s28, %s3933_s25 }
  0x8c   : > { %p3024_p10 = pnand %p3023_p7, %p3825_p12  ;;  %p3029_p8 = por %p3028_p5, %p3027_p11 }
  0x8e   : > { %p3025_p9 = pneg %p3024_p10  ;;  %p3031_p1 = por %p3030_p2, %p3029_p8 }
  0x90   : > { %p3032_p6 = pnand %p3031_p1, %p3025_p9 }
  0x92   : > { %3035 = shalt.err (!%p3032_p6)
}
  0x93   : > { %s3036_s6 = scalar_lea.vmem %s3936_s16, 256  ;;  %s3602_s21 = smov [#allocation11]  }
  0x94   : > { %p3037_p0 = scmp.ne.s32.totalorder %s3936_s16, %s3036_s6  ;;  %s3040_s22 = sshll.u32 %s3602_s21, 4  ;;  %s3041_s22 = int_to_ptr.vmem [resolvable:$false] %s3040_s22 }
  0x95   : > { %s3042_s27 = scalar_lea.vmem %s3041_s22, 512  ;;  %p3043_p13 = scmp.lt.s32.totalorder %s3936_s16, %s3041_s22 }
  0x96   : > { %p3038_p3 = pnand %p3037_p0, %p3825_p12  ;;  %p3044_p7 = scmp.lt.s32.totalorder %s3042_s27, %s3036_s6 }
  0x98   : > { %p3039_p4 = pneg %p3038_p3  ;;  %p3045_p10 = por %p3044_p7, %p3043_p13 }
  0x9a   : > { %p3046_p11 = pnand %p3045_p10, %p3039_p4 }
  0x9c   : > { %3049 = shalt.err (!%p3046_p11)
}
  0x9d   : > { %2789 = dma.hbm_to_vmem [thread:$0]  (%p3825_p12), %s3933_s25, 256, %s3936_s16, %s4743_s3, %s4746_s23, %s4746_s23, %s3601_s20  }
  0x9e   : > { %s4792_s7 = sld [smem:[#allocation61_spill]]  ;;  %s687_s6 = scalar_lea.vmem [#allocation14], %s3888_s14 }
  0x9f   : > { %s694_s21 = sshll.u32 %s687_s6, 4  ;;  %s4744_s22 = scalar_lea.sflag [#allocation15], %s3852_s17  ;;  %s3972_s21 = int_to_ptr.vmem [resolvable:$true] %s694_s21 }
  0xa4   : > { %s3969_s10 = scalar_lea.hbm %s4792_s7, %s3891_s26  ;;  %s3054_s28 = scalar_lea.hbm %s4792_s7, 512 }
  0xa5   : > { %s3050_s27 = scalar_lea.hbm %s3969_s10, 256  ;;  %p3055_p2 = scmp.lt.u32.totalorder %s3969_s10, %s4792_s7 }
  0xa6   : > { %p3051_p9 = scmp.ne.s32.totalorder %s3969_s10, %s3050_s27  ;;  %p3056_p1 = scmp.lt.u32.totalorder %s3054_s28, %s3050_s27 }
  0xa7   : > { %p3058_p0 = scmp.lt.u32.totalorder %s3050_s27, %s3969_s10 }
  0xa8   : > { %p3052_p5 = pnand %p3051_p9, %p3825_p12  ;;  %p3057_p6 = por %p3056_p1, %p3055_p2 }
  0xaa   : > { %p3053_p8 = pneg %p3052_p5  ;;  %p3059_p3 = por %p3058_p0, %p3057_p6 }
  0xac   : > { %p3060_p4 = pnand %p3059_p3, %p3053_p8 }
  0xae   : > { %3063 = shalt.err (!%p3060_p4)
}
  0xaf   : > { %s3064_s6 = scalar_lea.vmem %s3972_s21, 256  ;;  %s3603_s25 = smov [#allocation14]  }
  0xb0   : > { %p3065_p13 = scmp.ne.s32.totalorder %s3972_s21, %s3064_s6  ;;  %s3068_s16 = sshll.u32 %s3603_s25, 4  ;;  %s3069_s16 = int_to_ptr.vmem [resolvable:$false] %s3068_s16 }
  0xb1   : > { %s3070_s3 = scalar_lea.vmem %s3069_s16, 512  ;;  %p3071_p11 = scmp.lt.s32.totalorder %s3972_s21, %s3069_s16 }
  0xb2   : > { %p3066_p7 = pnand %p3065_p13, %p3825_p12  ;;  %p3072_p9 = scmp.lt.s32.totalorder %s3070_s3, %s3064_s6 }
  0xb4   : > { %p3067_p10 = pneg %p3066_p7  ;;  %p3073_p5 = por %p3072_p9, %p3071_p11 }
  0xb6   : > { %p3074_p2 = pnand %p3073_p5, %p3067_p10 }
  0xb8   : > { %3077 = shalt.err (!%p3074_p2)
}
  0xb9   : > { %2791 = dma.hbm_to_vmem [thread:$0]  (%p3825_p12), %s3969_s10, 256, %s3972_s21, %s4744_s22, %s4746_s23, %s4746_s23, %s3601_s20  }
  0xba   : > { %s4005_s12 = scalar_lea.hbm %s4704_s9, %s3891_s26  ;;  %s725_s6 = scalar_lea.vmem [#allocation17], %s3888_s14 }
  0xbb   : > { %s732_s25 = sshll.u32 %s725_s6, 4  ;;  %s4745_s16 = scalar_lea.sflag [#allocation18], %s3852_s17  ;;  %s4008_s25 = int_to_ptr.vmem [resolvable:$true] %s732_s25 }
  0xbc   : > { %s3078_s3 = scalar_lea.hbm %s4005_s12, 256  ;;  %s3082_s27 = scalar_lea.hbm %s4704_s9, 512 }
  0xbd   : > { %p3079_p8 = scmp.ne.s32.totalorder %s4005_s12, %s3078_s3  ;;  %p3083_p0 = scmp.lt.u32.totalorder %s4005_s12, %s4704_s9 }
  0xbe   : > { %p3084_p3 = scmp.lt.u32.totalorder %s3082_s27, %s3078_s3  ;;  %p3086_p13 = scmp.lt.u32.totalorder %s3078_s3, %s4005_s12 }
  0xbf   : > { %p3080_p1 = pnand %p3079_p8, %p3825_p12 }
  0xc0   : > { %p3085_p4 = por %p3084_p3, %p3083_p0 }
  0xc1   : > { %p3081_p6 = pneg %p3080_p1 }
  0xc2   : > { %p3087_p7 = por %p3086_p13, %p3085_p4 }
  0xc4   : > { %p3088_p10 = pnand %p3087_p7, %p3081_p6 }
  0xc6   : > { %3091 = shalt.err (!%p3088_p10)
}
  0xc7   : > { %s3092_s6 = scalar_lea.vmem %s4008_s25, 256  ;;  %s3604_s10 = smov [#allocation17]  }
  0xc8   : > { %p3093_p11 = scmp.ne.s32.totalorder %s4008_s25, %s3092_s6  ;;  %s3096_s21 = sshll.u32 %s3604_s10, 4  ;;  %s3097_s21 = int_to_ptr.vmem [resolvable:$false] %s3096_s21 }
  0xc9   : > { %s3098_s22 = scalar_lea.vmem %s3097_s21, 512  ;;  %p3099_p2 = scmp.lt.s32.totalorder %s4008_s25, %s3097_s21 }
  0xca   : > { %p3094_p9 = pnand %p3093_p11, %p3825_p12  ;;  %p3100_p8 = scmp.lt.s32.totalorder %s3098_s22, %s3092_s6 }
  0xcc   : > { %p3095_p5 = pneg %p3094_p9  ;;  %p3101_p1 = por %p3100_p8, %p3099_p2 }
  0xce   : > { %p3102_p0 = pnand %p3101_p1, %p3095_p5 }
  0xd0   : > { %3105 = shalt.err (!%p3102_p0)
}
  0xd1   : > { %2793 = dma.hbm_to_vmem [thread:$0]  (%p3825_p12), %s4005_s12, 256, %s4008_s25, %s4745_s16, %s4746_s23, %s4746_s23, %s3601_s20  }
  0xd2   : > { %s4041_s28 = scalar_lea.hbm %s4706_s11, %s3858_s0  ;;  %s762_s6 = scalar_lea.vmem [#allocation20], %s3855_s24 }
  0xd3   : > { %s769_s10 = sshll.u32 %s762_s6, 4  ;;  %s4748_s21 = scalar_lea.sflag [#allocation21], %s3852_s17  ;;  %s770_s10 = int_to_ptr.vmem [resolvable:$true] %s769_s10 }
  0xd4   : > { %s3106_s22 = scalar_lea.hbm %s4041_s28, 16  ;;  %s3110_s25 = scalar_lea.hbm %s4706_s11, 32 }
  0xd5   : > { %p3107_p6 = scmp.ne.s32.totalorder %s4041_s28, %s3106_s22  ;;  %p3111_p13 = scmp.lt.u32.totalorder %s4041_s28, %s4706_s11 }
  0xd6   : > { %p3112_p7 = scmp.lt.u32.totalorder %s3110_s25, %s3106_s22  ;;  %p3114_p11 = scmp.lt.u32.totalorder %s3106_s22, %s4041_s28 }
  0xd7   : > { %p3108_p3 = pnand %p3107_p6, %p3825_p12 }
  0xd8   : > { %p3113_p10 = por %p3112_p7, %p3111_p13 }
  0xd9   : > { %p3109_p4 = pneg %p3108_p3 }
  0xda   : > { %p3115_p9 = por %p3114_p11, %p3113_p10 }
  0xdc   : > { %p3116_p5 = pnand %p3115_p9, %p3109_p4 }
  0xde   : > { %3119 = shalt.err (!%p3116_p5)
}
  0xdf   : > { %s3120_s6 = scalar_lea.vmem %s770_s10, 16  ;;  %s3605_s16 = smov [#allocation20]  }
  0xe0   : > { %p3121_p2 = scmp.ne.s32.totalorder %s770_s10, %s3120_s6  ;;  %s3124_s23 = sshll.u32 %s3605_s16, 4  ;;  %s3125_s23 = int_to_ptr.vmem [resolvable:$false] %s3124_s23 }
  0xe1   : > { %s3126_s5 = scalar_lea.vmem %s3125_s23, 32  ;;  %p3127_p0 = scmp.lt.s32.totalorder %s770_s10, %s3125_s23 }
  0xe2   : > { %p3122_p8 = pnand %p3121_p2, %p3825_p12  ;;  %p3128_p6 = scmp.lt.s32.totalorder %s3126_s5, %s3120_s6 }
  0xe4   : > { %p3123_p1 = pneg %p3122_p8  ;;  %p3129_p3 = por %p3128_p6, %p3127_p0 }
  0xe6   : > { %p3130_p7 = pnand %p3129_p3, %p3123_p1 }
  0xe8   : > { %3133 = shalt.err (!%p3130_p7)
}
  0xe9   : > { %2795 = dma.hbm_to_vmem [thread:$0]  (%p3825_p12), %s4041_s28, 16, %s770_s10, %s4748_s21  }
  0xea   : > { %s4068_s12 = scalar_lea.hbm %s4708_s13, %s3891_s26  ;;  %s797_s23 = scalar_lea.vmem [#allocation23], %s3888_s14 }
  0xeb   : > { %s804_s25 = sshll.u32 %s797_s23, 4  ;;  %s2571_s3 = sshll.u32 %s3855_s24, 6  ;;  %s4071_s25 = int_to_ptr.vmem [resolvable:$true] %s804_s25 }
  0xec   : > { %s4749_s27 = scalar_lea.sflag [#allocation24], %s3852_s17  ;;  %s3134_s6 = scalar_lea.hbm %s4068_s12, 256 }
  0xed   : > { %p3135_p4 = scmp.ne.s32.totalorder %s4068_s12, %s3134_s6  ;;  %s3138_s26 = scalar_lea.hbm %s4708_s13, 512 }
  0xee   : > { %p3139_p11 = scmp.lt.u32.totalorder %s4068_s12, %s4708_s13  ;;  %p3140_p9 = scmp.lt.u32.totalorder %s3138_s26, %s3134_s6 }
  0xef   : > { %p3136_p13 = pnand %p3135_p4, %p3825_p12  ;;  %p3142_p2 = scmp.lt.u32.totalorder %s3134_s6, %s4068_s12 }
  0xf0   : > { %p3141_p5 = por %p3140_p9, %p3139_p11 }
  0xf1   : > { %p3137_p10 = pneg %p3136_p13 }
  0xf2   : > { %p3143_p8 = por %p3142_p2, %p3141_p5 }
  0xf4   : > { %p3144_p1 = pnand %p3143_p8, %p3137_p10 }
  0xf6   : > { %3147 = shalt.err (!%p3144_p1)
}
  0xf7   : > { %s3148_s14 = scalar_lea.vmem %s4071_s25, 256  ;;  %s3606_s16 = smov [#allocation23]  }
  0xf8   : > { %p3149_p0 = scmp.ne.s32.totalorder %s4071_s25, %s3148_s14  ;;  %s3152_s23 = sshll.u32 %s3606_s16, 4  ;;  %s3153_s23 = int_to_ptr.vmem [resolvable:$false] %s3152_s23 }
  0xf9   : > { %s3154_s28 = scalar_lea.vmem %s3153_s23, 512  ;;  %p3155_p7 = scmp.lt.s32.totalorder %s4071_s25, %s3153_s23 }
  0xfa   : > { %p3150_p6 = pnand %p3149_p0, %p3825_p12  ;;  %p3156_p4 = scmp.lt.s32.totalorder %s3154_s28, %s3148_s14 }
  0xfc   : > { %p3151_p3 = pneg %p3150_p6  ;;  %p3157_p13 = por %p3156_p4, %p3155_p7 }
  0xfe   : > { %p3158_p11 = pnand %p3157_p13, %p3151_p3 }
 0x100   : > { %3161 = shalt.err (!%p3158_p11)
}
 0x101   : > { %s4793_s6 = smov 64   ;;  %s2635_s10 = sshll.u32 %s3588_s18, 10 }
 0x102   : > { %2797 = dma.hbm_to_vmem [thread:$0]  (%p3825_p12), %s4068_s12, 256, %s4071_s25, %s4749_s27, %s4793_s6, %s4793_s6, %s3601_s20  }
 0x103   : > { %s4105_s22 = scalar_lea.hbm %s4710_s15, %s2635_s10  ;;  %s835_s14 = scalar_lea.vmem [#allocation26], %s2571_s3 }
 0x104   : > { %s842_s16 = sshll.u32 %s835_s14, 4  ;;  %s555_s23 = sand.u32 1, %s3576_s29   ;;  %s4109_s16 = int_to_ptr.vmem [resolvable:$true] %s842_s16 }
 0x105   : > { %s4752_s28 = scalar_lea.sflag [#allocation27], %s3852_s17  ;;  %s3162_s21 = scalar_lea.hbm %s4105_s22, 1024 }
 0x106   : > { %p3163_p10 = scmp.ne.s32.totalorder %s4105_s22, %s3162_s21  ;;  %s3166_s10 = scalar_lea.hbm %s4710_s15, 2048 }
 0x107   : > { %p3167_p2 = scmp.lt.u32.totalorder %s4105_s22, %s4710_s15  ;;  %p3168_p8 = scmp.lt.u32.totalorder %s3166_s10, %s3162_s21 }
 0x108   : > { %p3164_p9 = pnand %p3163_p10, %p3825_p12  ;;  %p3170_p0 = scmp.lt.u32.totalorder %s3162_s21, %s4105_s22 }
 0x109   : > { %p3169_p1 = por %p3168_p8, %p3167_p2 }
 0x10a   : > { %p3165_p5 = pneg %p3164_p9 }
 0x10b   : > { %p3171_p6 = por %p3170_p0, %p3169_p1 }
 0x10d   : > { %p3172_p3 = pnand %p3171_p6, %p3165_p5 }
 0x10f   : > { %3175 = shalt.err (!%p3172_p3)
}
 0x110   : > { %s3176_s3 = scalar_lea.vmem %s4109_s16, 1024  ;;  %s3607_s14 = smov [#allocation26]  }
 0x111   : > { %p3177_p7 = scmp.ne.s32.totalorder %s4109_s16, %s3176_s3  ;;  %s3180_s12 = sshll.u32 %s3607_s14, 4  ;;  %s3181_s12 = int_to_ptr.vmem [resolvable:$false] %s3180_s12 }
 0x112   : > { %s3182_s25 = scalar_lea.vmem %s3181_s12, 2048  ;;  %p3183_p11 = scmp.lt.s32.totalorder %s4109_s16, %s3181_s12 }
 0x113   : > { %p3178_p4 = pnand %p3177_p7, %p3825_p12  ;;  %p3184_p10 = scmp.lt.s32.totalorder %s3182_s25, %s3176_s3 }
 0x115   : > { %p3179_p13 = pneg %p3178_p4  ;;  %p3185_p9 = por %p3184_p10, %p3183_p11 }
 0x117   : > { %p3186_p2 = pnand %p3185_p9, %p3179_p13 }
 0x119   : > { %3189 = shalt.err (!%p3186_p2)
}
 0x11a   : > { %2799 = dma.hbm_to_vmem [thread:$0]  (%p3825_p12), %s4105_s22, 1024, %s4109_s16, %s4752_s28, %s4793_s6, %s4793_s6, %s3601_s20  }
 0x11b   : > { %s2545_s21 = sshll.u32 %s555_s23, 3  ;;  %s2546_s10 = sshll.u32 %s3592_s19, 7 }
 0x11c   : > { %s4794_s3 = sld [smem:[#allocation55_spill]]  ;;  %s559_s12 = scalar_lea.vmem [#allocation2], %s2545_s21 }
 0x11d   : > { %s566_s25 = sshll.u32 %s559_s12, 4  ;;  %s556_s27 = scalar_lea.sflag [#allocation3], %s555_s23  ;;  %s567_s25 = int_to_ptr.vmem [resolvable:$true] %s566_s25 }
 0x11e   : > { %p4795_p8 = scmp.ne.s32.totalorder %s4774_s30, 0 }
 0x122   : > { %s4145_s14 = scalar_lea.hbm %s4794_s3, %s2546_s10  ;;  %s3194_s22 = scalar_lea.hbm %s4794_s3, 256 }
 0x123   : > { %s3190_s7 = scalar_lea.hbm %s4145_s14, 128  ;;  %p3195_p6 = scmp.lt.u32.totalorder %s4145_s14, %s4794_s3 }
 0x124   : > { %p3191_p5 = scmp.ne.s32.totalorder %s4145_s14, %s3190_s7  ;;  %p3196_p3 = scmp.lt.u32.totalorder %s3194_s22, %s3190_s7 }
 0x125   : > { %p3198_p4 = scmp.lt.u32.totalorder %s3190_s7, %s4145_s14 }
 0x126   : > { %p3192_p1 = pnand %p3191_p5, %p4795_p8  ;;  %p3197_p7 = por %p3196_p3, %p3195_p6 }
 0x128   : > { %p3193_p0 = pneg %p3192_p1  ;;  %p3199_p13 = por %p3198_p4, %p3197_p7 }
 0x12a   : > { %p3200_p11 = pnand %p3199_p13, %p3193_p0 }
 0x12c   : > { %3203 = shalt.err (!%p3200_p11)
}
 0x12d   : > { %s3204_s23 = scalar_lea.vmem %s567_s25, 128  ;;  %s3608_s21 = smov [#allocation2]  }
 0x12e   : > { %p3205_p10 = scmp.ne.s32.totalorder %s567_s25, %s3204_s23  ;;  %s3208_s26 = sshll.u32 %s3608_s21, 4  ;;  %s3209_s26 = int_to_ptr.vmem [resolvable:$false] %s3208_s26 }
 0x12f   : > { %s3210_s5 = scalar_lea.vmem %s3209_s26, 256  ;;  %p3211_p5 = scmp.lt.s32.totalorder %s567_s25, %s3209_s26 }
 0x130   : > { %p3206_p9 = pnand %p3205_p10, %p4795_p8  ;;  %p3212_p1 = scmp.lt.s32.totalorder %s3210_s5, %s3204_s23 }
 0x132   : > { %p3207_p2 = pneg %p3206_p9  ;;  %p3213_p12 = por %p3212_p1, %p3211_p5 }
 0x134   : > { %p3214_p3 = pnand %p3213_p12, %p3207_p2 }
 0x136   : > { %3217 = shalt.err (!%p3214_p3)
}
 0x137   : > { %2784 = dma.hbm_to_vmem [thread:$0]  (%p4795_p8), %s4145_s14, 128, %s567_s25, %s556_s27  }
 0x138   : > { %s4796_s2 = sld [smem:[#allocation57_spill]]  ;;  %s593_s6 = scalar_lea.vmem [#allocation7], %s3855_s24 }
 0x139   : > { %s600_s22 = sshll.u32 %s593_s6, 4  ;;  %p4797_p0 = scmp.ne.s32.totalorder %s4780_s8, 0  ;;  %s601_s22 = int_to_ptr.vmem [resolvable:$true] %s600_s22 }
 0x13e   : > { %s4170_s20 = scalar_lea.hbm %s4796_s2, %s3858_s0  ;;  %s3222_s27 = scalar_lea.hbm %s4796_s2, 32 }
 0x13f   : > { %s3218_s16 = scalar_lea.hbm %s4170_s20, 16  ;;  %p3223_p8 = scmp.lt.u32.totalorder %s4170_s20, %s4796_s2 }
 0x140   : > { %p3219_p12 = scmp.ne.s32.totalorder %s4170_s20, %s3218_s16  ;;  %p3224_p4 = scmp.lt.u32.totalorder %s3222_s27, %s3218_s16 }
 0x141   : > { %p3226_p11 = scmp.lt.u32.totalorder %s3218_s16, %s4170_s20 }
 0x142   : > { %p3220_p6 = pnand %p3219_p12, %p4797_p0  ;;  %p3225_p13 = por %p3224_p4, %p3223_p8 }
 0x144   : > { %p3221_p7 = pneg %p3220_p6  ;;  %p3227_p10 = por %p3226_p11, %p3225_p13 }
 0x146   : > { %p3228_p9 = pnand %p3227_p10, %p3221_p7 }
 0x148   : > { %3231 = shalt.err (!%p3228_p9)
}
 0x149   : > { %s3232_s23 = scalar_lea.vmem %s601_s22, 16  ;;  %s3609_s21 = smov [#allocation7]  }
 0x14a   : > { %p3233_p2 = scmp.ne.s32.totalorder %s601_s22, %s3232_s23  ;;  %s3236_s26 = sshll.u32 %s3609_s21, 4  ;;  %s3237_s26 = int_to_ptr.vmem [resolvable:$false] %s3236_s26 }
 0x14b   : > { %s3238_s5 = scalar_lea.vmem %s3237_s26, 32  ;;  %p3239_p3 = scmp.lt.s32.totalorder %s601_s22, %s3237_s26 }
 0x14c   : > { %p3234_p5 = pnand %p3233_p2, %p4797_p0  ;;  %p3240_p12 = scmp.lt.s32.totalorder %s3238_s5, %s3232_s23 }
 0x14e   : > { %p3235_p1 = pneg %p3234_p5  ;;  %p3241_p6 = por %p3240_p12, %p3239_p3 }
 0x150   : > { %p3242_p4 = pnand %p3241_p6, %p3235_p1 }
 0x152   : > { %3245 = shalt.err (!%p3242_p4)
}
 0x153   : > { %s4798_s7 = scalar_lea.sflag [#allocation6], %s3852_s17  ;;  %s4196_s16 = scalar_lea.hbm %s4699_s4, %s3858_s0 }
 0x154   : > { %2786 = dma.hbm_to_vmem [thread:$0]  (%p4797_p0), %s4170_s20, 16, %s601_s22, %s4798_s7  }
 0x155   : > { %s631_s30 = scalar_lea.vmem [#allocation10], %s3855_s24  ;;  %s3246_s27 = scalar_lea.hbm %s4196_s16, 16 }
 0x156   : > { %s638_s10 = sshll.u32 %s631_s30, 4  ;;  %p3247_p7 = scmp.ne.s32.totalorder %s4196_s16, %s3246_s27  ;;  %s639_s10 = int_to_ptr.vmem [resolvable:$true] %s638_s10 }
 0x157   : > { %s3250_s20 = scalar_lea.hbm %s4699_s4, 32  ;;  %p3251_p11 = scmp.lt.u32.totalorder %s4196_s16, %s4699_s4 }
 0x158   : > { %p3248_p8 = pnand %p3247_p7, %p4797_p0  ;;  %p3252_p10 = scmp.lt.u32.totalorder %s3250_s20, %s3246_s27 }
 0x159   : > { %p3254_p2 = scmp.lt.u32.totalorder %s3246_s27, %s4196_s16 }
 0x15a   : > { %p3249_p13 = pneg %p3248_p8  ;;  %p3253_p9 = por %p3252_p10, %p3251_p11 }
 0x15c   : > { %p3255_p5 = por %p3254_p2, %p3253_p9 }
 0x15e   : > { %p3256_p1 = pnand %p3255_p5, %p3249_p13 }
 0x160   : > { %3259 = shalt.err (!%p3256_p1)
}
 0x161   : > { %s3260_s21 = scalar_lea.vmem %s639_s10, 16  ;;  %s3610_s26 = smov [#allocation10]  }
 0x162   : > { %p3261_p3 = scmp.ne.s32.totalorder %s639_s10, %s3260_s21  ;;  %s3264_s5 = sshll.u32 %s3610_s26, 4  ;;  %s3265_s5 = int_to_ptr.vmem [resolvable:$false] %s3264_s5 }
 0x163   : > { %s3266_s7 = scalar_lea.vmem %s3265_s5, 32  ;;  %p3267_p4 = scmp.lt.s32.totalorder %s639_s10, %s3265_s5 }
 0x164   : > { %p3262_p12 = pnand %p3261_p3, %p4797_p0  ;;  %p3268_p7 = scmp.lt.s32.totalorder %s3266_s7, %s3260_s21 }
 0x166   : > { %p3263_p6 = pneg %p3262_p12  ;;  %p3269_p8 = por %p3268_p7, %p3267_p4 }
 0x168   : > { %p3270_p10 = pnand %p3269_p8, %p3263_p6 }
 0x16a   : > { %3273 = shalt.err (!%p3270_p10)
}
 0x16b   : > { %s4799_s12 = scalar_lea.sflag [#allocation9], %s3852_s17  ;;  %s4800_s27 = sld [smem:[#allocation60_spill]] }
 0x16c   : > { %2788 = dma.hbm_to_vmem [thread:$0]  (%p4797_p0), %s4196_s16, 16, %s639_s10, %s4799_s12  }
 0x16d   : > { %s669_s20 = scalar_lea.vmem [#allocation13], %s3855_s24 }
 0x16e   : > { %s676_s22 = sshll.u32 %s669_s20, 4  ;;  %s677_s22 = int_to_ptr.vmem [resolvable:$true] %s676_s22 }
 0x171   : > { %s4801_s14 = smov %s4800_s27  ;;  %s4222_s25 = scalar_lea.hbm %s4800_s27, %s3858_s0 }
 0x172   : > { %s3274_s23 = scalar_lea.hbm %s4222_s25, 16  ;;  %s3278_s16 = scalar_lea.hbm %s4801_s14, 32 }
 0x173   : > { %p3275_p13 = scmp.ne.s32.totalorder %s4222_s25, %s3274_s23  ;;  %p3279_p2 = scmp.lt.u32.totalorder %s4222_s25, %s4801_s14 }
 0x174   : > { %p3280_p5 = scmp.lt.u32.totalorder %s3278_s16, %s3274_s23  ;;  %p3282_p3 = scmp.lt.u32.totalorder %s3274_s23, %s4222_s25 }
 0x175   : > { %p3276_p11 = pnand %p3275_p13, %p4797_p0 }
 0x176   : > { %p3281_p1 = por %p3280_p5, %p3279_p2 }
 0x177   : > { %p3277_p9 = pneg %p3276_p11 }
 0x178   : > { %p3283_p12 = por %p3282_p3, %p3281_p1 }
 0x17a   : > { %p3284_p6 = pnand %p3283_p12, %p3277_p9 }
 0x17c   : > { %3287 = shalt.err (!%p3284_p6)
}
 0x17d   : > { %s3288_s7 = scalar_lea.vmem %s677_s22, 16  ;;  %s3611_s12 = smov [#allocation13]  }
 0x17e   : > { %p3289_p4 = scmp.ne.s32.totalorder %s677_s22, %s3288_s7  ;;  %s3292_s6 = sshll.u32 %s3611_s12, 4  ;;  %s3293_s6 = int_to_ptr.vmem [resolvable:$false] %s3292_s6 }
 0x17f   : > { %s3294_s30 = scalar_lea.vmem %s3293_s6, 32  ;;  %p3295_p10 = scmp.lt.s32.totalorder %s677_s22, %s3293_s6 }
 0x180   : > { %p3290_p7 = pnand %p3289_p4, %p4797_p0  ;;  %p3296_p13 = scmp.lt.s32.totalorder %s3294_s30, %s3288_s7 }
 0x182   : > { %p3291_p8 = pneg %p3290_p7  ;;  %p3297_p11 = por %p3296_p13, %p3295_p10 }
 0x184   : > { %p3298_p2 = pnand %p3297_p11, %p3291_p8 }
 0x186   : > { %3301 = shalt.err (!%p3298_p2)
}
 0x187   : > { %s4802_s27 = scalar_lea.sflag [#allocation12], %s3852_s17  ;;  %s4803_s21 = sld [smem:[#allocation62_spill]] }
 0x188   : > { %2790 = dma.hbm_to_vmem [thread:$0]  (%p4797_p0), %s4222_s25, 16, %s677_s22, %s4802_s27  }
 0x189   : > { %s707_s16 = scalar_lea.vmem [#allocation16], %s3855_s24 }
 0x18a   : > { %s714_s10 = sshll.u32 %s707_s16, 4  ;;  %s715_s10 = int_to_ptr.vmem [resolvable:$true] %s714_s10 }
 0x18d   : > { %s4248_s26 = scalar_lea.hbm %s4803_s21, %s3858_s0  ;;  %s3306_s25 = scalar_lea.hbm %s4803_s21, 32 }
 0x18e   : > { %s3302_s5 = scalar_lea.hbm %s4248_s26, 16  ;;  %p3307_p3 = scmp.lt.u32.totalorder %s4248_s26, %s4803_s21 }
 0x18f   : > { %p3303_p9 = scmp.ne.s32.totalorder %s4248_s26, %s3302_s5  ;;  %p3308_p12 = scmp.lt.u32.totalorder %s3306_s25, %s3302_s5 }
 0x190   : > { %p3310_p4 = scmp.lt.u32.totalorder %s3302_s5, %s4248_s26 }
 0x191   : > { %p3304_p5 = pnand %p3303_p9, %p4797_p0  ;;  %p3309_p6 = por %p3308_p12, %p3307_p3 }
 0x193   : > { %p3305_p1 = pneg %p3304_p5  ;;  %p3311_p7 = por %p3310_p4, %p3309_p6 }
 0x195   : > { %p3312_p8 = pnand %p3311_p7, %p3305_p1 }
 0x197   : > { %3315 = shalt.err (!%p3312_p8)
}
 0x198   : > { %s3316_s30 = scalar_lea.vmem %s715_s10, 16  ;;  %s3612_s27 = smov [#allocation16]  }
 0x199   : > { %p3317_p10 = scmp.ne.s32.totalorder %s715_s10, %s3316_s30  ;;  %s3320_s20 = sshll.u32 %s3612_s27, 4  ;;  %s3321_s20 = int_to_ptr.vmem [resolvable:$false] %s3320_s20 }
 0x19a   : > { %s3322_s23 = scalar_lea.vmem %s3321_s20, 32  ;;  %p3323_p2 = scmp.lt.s32.totalorder %s715_s10, %s3321_s20 }
 0x19b   : > { %p3318_p13 = pnand %p3317_p10, %p4797_p0  ;;  %p3324_p9 = scmp.lt.s32.totalorder %s3322_s23, %s3316_s30 }
 0x19d   : > { %p3319_p11 = pneg %p3318_p13  ;;  %p3325_p5 = por %p3324_p9, %p3323_p2 }
 0x19f   : > { %p3326_p3 = pnand %p3325_p5, %p3319_p11 }
 0x1a1   : > { %3329 = shalt.err (!%p3326_p3)
}
 0x1a2   : > { %s4804_s16 = scalar_lea.sflag [#allocation15], %s3852_s17  ;;  %s4805_s12 = sld [smem:[#allocation63_spill]] }
 0x1a3   : > { %2792 = dma.hbm_to_vmem [thread:$0]  (%p4797_p0), %s4248_s26, 16, %s715_s10, %s4804_s16  }
 0x1a4   : > { %s745_s22 = scalar_lea.vmem [#allocation19], %s3855_s24 }
 0x1a5   : > { %s752_s6 = sshll.u32 %s745_s22, 4  ;;  %s753_s6 = int_to_ptr.vmem [resolvable:$true] %s752_s6 }
 0x1a8   : > { %s4274_s25 = scalar_lea.hbm %s4805_s12, %s3858_s0  ;;  %s3334_s26 = scalar_lea.hbm %s4805_s12, 32 }
 0x1a9   : > { %s3330_s30 = scalar_lea.hbm %s4274_s25, 16  ;;  %p3335_p4 = scmp.lt.u32.totalorder %s4274_s25, %s4805_s12 }
 0x1aa   : > { %p3331_p1 = scmp.ne.s32.totalorder %s4274_s25, %s3330_s30  ;;  %p3336_p7 = scmp.lt.u32.totalorder %s3334_s26, %s3330_s30 }
 0x1ab   : > { %p3338_p10 = scmp.lt.u32.totalorder %s3330_s30, %s4274_s25 }
 0x1ac   : > { %p3332_p12 = pnand %p3331_p1, %p4797_p0  ;;  %p3337_p8 = por %p3336_p7, %p3335_p4 }
 0x1ae   : > { %p3333_p6 = pneg %p3332_p12  ;;  %p3339_p13 = por %p3338_p10, %p3337_p8 }
 0x1b0   : > { %p3340_p11 = pnand %p3339_p13, %p3333_p6 }
 0x1b2   : > { %3343 = shalt.err (!%p3340_p11)
}
 0x1b3   : > { %s3344_s16 = scalar_lea.vmem %s753_s6, 16  ;;  %s3613_s5 = smov [#allocation19]  }
 0x1b4   : > { %p3345_p2 = scmp.ne.s32.totalorder %s753_s6, %s3344_s16  ;;  %s3348_s7 = sshll.u32 %s3613_s5, 4  ;;  %s3349_s7 = int_to_ptr.vmem [resolvable:$false] %s3348_s7 }
 0x1b5   : > { %s3350_s22 = scalar_lea.vmem %s3349_s7, 32  ;;  %p3351_p3 = scmp.lt.s32.totalorder %s753_s6, %s3349_s7 }
 0x1b6   : > { %p3346_p9 = pnand %p3345_p2, %p4797_p0  ;;  %p3352_p1 = scmp.lt.s32.totalorder %s3350_s22, %s3344_s16 }
 0x1b8   : > { %p3347_p5 = pneg %p3346_p9  ;;  %p3353_p12 = por %p3352_p1, %p3351_p3 }
 0x1ba   : > { %p3354_p4 = pnand %p3353_p12, %p3347_p5 }
 0x1bc   : > { %3357 = shalt.err (!%p3354_p4)
}
 0x1bd   : > { %s4806_s30 = scalar_lea.sflag [#allocation18], %s3852_s17  ;;  %s4807_s26 = sld [smem:[#allocation64_spill]] }
 0x1be   : > { %2794 = dma.hbm_to_vmem [thread:$0]  (%p4797_p0), %s4274_s25, 16, %s753_s6, %s4806_s30  }
 0x1bf   : > { %s779_s16 = scalar_lea.vmem [#allocation22], %s3855_s24 }
 0x1c0   : > { %s786_s5 = sshll.u32 %s779_s16, 4  ;;  %s787_s5 = int_to_ptr.vmem [resolvable:$true] %s786_s5 }
 0x1c3   : > { %s4808_s10 = smov %s4807_s26  ;;  %s4300_s23 = scalar_lea.hbm %s4807_s26, %s3858_s0 }
 0x1c4   : > { %s3358_s7 = scalar_lea.hbm %s4300_s23, 16  ;;  %s3362_s25 = scalar_lea.hbm %s4808_s10, 32 }
 0x1c5   : > { %p3359_p6 = scmp.ne.s32.totalorder %s4300_s23, %s3358_s7  ;;  %p3363_p10 = scmp.lt.u32.totalorder %s4300_s23, %s4808_s10 }
 0x1c6   : > { %p3364_p13 = scmp.lt.u32.totalorder %s3362_s25, %s3358_s7  ;;  %p3366_p2 = scmp.lt.u32.totalorder %s3358_s7, %s4300_s23 }
 0x1c7   : > { %p3360_p7 = pnand %p3359_p6, %p4797_p0 }
 0x1c8   : > { %p3365_p11 = por %p3364_p13, %p3363_p10 }
 0x1c9   : > { %p3361_p8 = pneg %p3360_p7 }
 0x1ca   : > { %p3367_p9 = por %p3366_p2, %p3365_p11 }
 0x1cc   : > { %p3368_p5 = pnand %p3367_p9, %p3361_p8 }
 0x1ce   : > { %3371 = shalt.err (!%p3368_p5)
}
 0x1cf   : > { %s3372_s27 = scalar_lea.vmem %s787_s5, 16  ;;  %s3614_s20 = smov [#allocation22]  }
 0x1d0   : > { %p3373_p3 = scmp.ne.s32.totalorder %s787_s5, %s3372_s27  ;;  %s3376_s26 = sshll.u32 %s3614_s20, 4  ;;  %s3377_s26 = int_to_ptr.vmem [resolvable:$false] %s3376_s26 }
 0x1d1   : > { %s3378_s28 = scalar_lea.vmem %s3377_s26, 32  ;;  %p3379_p4 = scmp.lt.s32.totalorder %s787_s5, %s3377_s26 }
 0x1d2   : > { %p3374_p1 = pnand %p3373_p3, %p4797_p0  ;;  %p3380_p6 = scmp.lt.s32.totalorder %s3378_s28, %s3372_s27 }
 0x1d4   : > { %p3375_p12 = pneg %p3374_p1  ;;  %p3381_p7 = por %p3380_p6, %p3379_p4 }
 0x1d6   : > { %p3382_p10 = pnand %p3381_p7, %p3375_p12 }
 0x1d8   : > { %3385 = shalt.err (!%p3382_p10)
}
 0x1d9   : > { %s4809_s16 = scalar_lea.sflag [#allocation21], %s3852_s17  ;;  %s4810_s25 = sld [smem:[#allocation65_spill]] }
 0x1da   : > { %2796 = dma.hbm_to_vmem [thread:$0]  (%p4797_p0), %s4300_s23, 16, %s787_s5, %s4809_s16  }
 0x1db   : > { %s817_s27 = scalar_lea.vmem [#allocation25], %s3855_s24 }
 0x1dc   : > { %s824_s20 = sshll.u32 %s817_s27, 4  ;;  %s825_s20 = int_to_ptr.vmem [resolvable:$true] %s824_s20 }
 0x1df   : > { %s4811_s6 = smov %s4810_s25  ;;  %s4326_s30 = scalar_lea.hbm %s4810_s25, %s3858_s0 }
 0x1e0   : > { %s3386_s26 = scalar_lea.hbm %s4326_s30, 16  ;;  %s3390_s23 = scalar_lea.hbm %s4811_s6, 32 }
 0x1e1   : > { %p3387_p8 = scmp.ne.s32.totalorder %s4326_s30, %s3386_s26  ;;  %p3391_p2 = scmp.lt.u32.totalorder %s4326_s30, %s4811_s6 }
 0x1e2   : > { %p3392_p9 = scmp.lt.u32.totalorder %s3390_s23, %s3386_s26  ;;  %p3394_p3 = scmp.lt.u32.totalorder %s3386_s26, %s4326_s30 }
 0x1e3   : > { %p3388_p13 = pnand %p3387_p8, %p4797_p0 }
 0x1e4   : > { %p3393_p5 = por %p3392_p9, %p3391_p2 }
 0x1e5   : > { %p3389_p11 = pneg %p3388_p13 }
 0x1e6   : > { %p3395_p1 = por %p3394_p3, %p3393_p5 }
 0x1e8   : > { %p3396_p12 = pnand %p3395_p1, %p3389_p11 }
 0x1ea   : > { %3399 = shalt.err (!%p3396_p12)
}
 0x1eb   : > { %s3400_s7 = scalar_lea.vmem %s825_s20, 16  ;;  %s3615_s22 = smov [#allocation25]  }
 0x1ec   : > { %p3401_p4 = scmp.ne.s32.totalorder %s825_s20, %s3400_s7  ;;  %s3404_s25 = sshll.u32 %s3615_s22, 4  ;;  %s3405_s25 = int_to_ptr.vmem [resolvable:$false] %s3404_s25 }
 0x1ed   : > { %s3406_s2 = scalar_lea.vmem %s3405_s25, 32  ;;  %p3407_p10 = scmp.lt.s32.totalorder %s825_s20, %s3405_s25 }
 0x1ee   : > { %p3402_p6 = pnand %p3401_p4, %p4797_p0  ;;  %p3408_p8 = scmp.lt.s32.totalorder %s3406_s2, %s3400_s7 }
 0x1f0   : > { %p3403_p7 = pneg %p3402_p6  ;;  %p3409_p13 = por %p3408_p8, %p3407_p10 }
 0x1f2   : > { %p3410_p2 = pnand %p3409_p13, %p3403_p7 }
 0x1f4   : > { %3413 = shalt.err (!%p3410_p2)
}
 0x1f5   : > { %s4812_s27 = scalar_lea.sflag [#allocation24], %s3852_s17  ;;  %s4813_s23 = sld [smem:[#allocation66_spill]] }
 0x1f6   : > { %2798 = dma.hbm_to_vmem [thread:$0]  (%p4797_p0), %s4326_s30, 16, %s825_s20, %s4812_s27  }
 0x1f7   : > { %s855_s16 = scalar_lea.vmem [#allocation28], %s3855_s24 }
 0x1f8   : > { %s862_s7 = sshll.u32 %s855_s16, 4  ;;  %s863_s7 = int_to_ptr.vmem [resolvable:$true] %s862_s7 }
 0x1fb   : > { %s4352_s5 = scalar_lea.hbm %s4813_s23, %s3858_s0  ;;  %s3418_s30 = scalar_lea.hbm %s4813_s23, 32 }
 0x1fc   : > { %s3414_s22 = scalar_lea.hbm %s4352_s5, 16  ;;  %p3419_p3 = scmp.lt.u32.totalorder %s4352_s5, %s4813_s23 }
 0x1fd   : > { %p3415_p11 = scmp.ne.s32.totalorder %s4352_s5, %s3414_s22  ;;  %p3420_p1 = scmp.lt.u32.totalorder %s3418_s30, %s3414_s22 }
 0x1fe   : > { %p3422_p4 = scmp.lt.u32.totalorder %s3414_s22, %s4352_s5 }
 0x1ff   : > { %p3416_p9 = pnand %p3415_p11, %p4797_p0  ;;  %p3421_p12 = por %p3420_p1, %p3419_p3 }
 0x201   : > { %p3417_p5 = pneg %p3416_p9  ;;  %p3423_p6 = por %p3422_p4, %p3421_p12 }
 0x203   : > { %p3424_p7 = pnand %p3423_p6, %p3417_p5 }
 0x205   : > { %3427 = shalt.err (!%p3424_p7)
}
 0x206   : > { %s3428_s24 = scalar_lea.vmem %s863_s7, 16  ;;  %s3616_s0 = smov [#allocation28]  }
 0x207   : > { %p3429_p10 = scmp.ne.s32.totalorder %s863_s7, %s3428_s24  ;;  %s3432_s26 = sshll.u32 %s3616_s0, 4  ;;  %s3433_s26 = int_to_ptr.vmem [resolvable:$false] %s3432_s26 }
 0x208   : > { %s3434_s28 = scalar_lea.vmem %s3433_s26, 32  ;;  %p3435_p2 = scmp.lt.s32.totalorder %s863_s7, %s3433_s26 }
 0x209   : > { %p3430_p8 = pnand %p3429_p10, %p4797_p0  ;;  %p3436_p11 = scmp.lt.s32.totalorder %s3434_s28, %s3428_s24 }
 0x20b   : > { %p3431_p13 = pneg %p3430_p8  ;;  %p3437_p9 = por %p3436_p11, %p3435_p2 }
 0x20d   : > { %p3438_p1 = pnand %p3437_p9, %p3431_p13 }
 0x20f   : > { %3441 = shalt.err (!%p3438_p1)
}
 0x210   : > { %s4814_s16 = scalar_lea.sflag [#allocation27], %s3852_s17 }
 0x211   : > { %2800 = dma.hbm_to_vmem [thread:$0]  (%p4797_p0), %s4352_s5, 16, %s863_s7, %s4814_s16  }
 0x212 PF: > { %p2575_p5 = scmp.ge.s32.totalorder %s3596_s1, 1  ;;  %p867_p3 = scmp.lt.s32.totalorder %s3596_s1, 5 }
 0x214   : > { %p868_p12 = pnand %p2575_p5, %p867_p3 }
 0x215   : > { %s4815_s22 = sld [smem:[#allocation43_spill]] (!%p868_p12)  ;;  %s4816_s25 = sld [smem:[#allocation49_spill]] (!%p868_p12) }
 0x216   : > { %871 = sbr.rel (%p868_p12) target bundleno = 3183 (0xc6f), region = 88 }
 0x21b   : > { %s4377_s2 = sand.u32 (!%p868_p12), 1, %s4815_s22   ;;  %p4817_p0 = scmp.ne.s32.totalorder (!%p868_p12), %s4816_s25, 0 }
 0x21c   : > { %s2576_s30 = sshll.u32 (!%p868_p12), %s4377_s2, 3  ;;  %s874_s8 = scalar_lea.sflag (!%p868_p12), [#allocation3], %s4377_s2 }
 0x21d   : > { %s4383_s17 = scalar_lea.vmem [#allocation2], %s2576_s30 }
 0x21e   : > { %3515 = dma.done.wait (%p4817_p0), %s874_s8, 128  }
 0x21f   : > { %3517 = vsyncadd (%p4817_p0), %s874_s8, 4294967168  ;;  %s4818_s5 = sld [smem:[#allocation46_spill]]  ;;  %s4819_s7 = sld [smem:[#allocation40_spill]] }
 0x220   : > { %s4820_s20 = sld [smem:[#allocation52_spill]] }
 0x225   : > { %s4390_s27 = sand.u32 1, %s4818_s5   ;;  %s4393_s24 = sand.u32 1, %s4819_s7  }
 0x226   : > { %s883_s0 = scalar_lea.sflag [#allocation6], %s4390_s27  ;;  %p4821_p4 = scmp.ne.s32.totalorder %s4820_s20, 0 }
 0x228   : > { %3519 = dma.done.wait (%p4821_p4), %s883_s0, 32  }
 0x229   : > { %3521 = vsyncadd (%p4821_p4), %s883_s0, 4294967264  ;;  %s4402_s28 = sshll.u32 %s4393_s24, 4  ;;  %s899_s22 = scalar_lea.sflag [#allocation9], %s4390_s27 }
 0x22a   : > { %s902_s25 = scalar_lea.vmem [#allocation8], %s4402_s28 }
 0x22b   : > { %3523 = dma.done.wait (%p4821_p4), %s899_s22, 272  }
 0x22c   : > { %3525 = vsyncadd (%p4821_p4), %s899_s22, 4294967024  ;;  %s916_s5 = scalar_lea.sflag [#allocation12], %s4390_s27 }
 0x22d   : > { %3527 = dma.done.wait (%p4821_p4), %s916_s5, 272  }
 0x22e   : > { %3529 = vsyncadd (%p4821_p4), %s916_s5, 4294967024  ;;  %s933_s16 = scalar_lea.sflag [#allocation15], %s4390_s27 }
 0x22f   : > { %3531 = dma.done.wait (%p4821_p4), %s933_s16, 272  }
 0x230   : > { %3533 = vsyncadd (%p4821_p4), %s933_s16, 4294967024  ;;  %s950_s8 = scalar_lea.sflag [#allocation18], %s4390_s27 }
 0x231   : > { %3535 = dma.done.wait (%p4821_p4), %s950_s8, 272  }
 0x232   : > { %3537 = vsyncadd (%p4821_p4), %s950_s8, 4294967024  ;;  %s967_s0 = scalar_lea.sflag [#allocation21], %s4390_s27 }
 0x233   : > { %3539 = dma.done.wait (%p4821_p4), %s967_s0, 32  }
 0x234   : > { %3541 = vsyncadd (%p4821_p4), %s967_s0, 4294967264  ;;  %s983_s7 = scalar_lea.sflag [#allocation24], %s4390_s27 }
 0x235   : > { %3543 = dma.done.wait (%p4821_p4), %s983_s7, 272  }
 0x236   : > { %3545 = vsyncadd (%p4821_p4), %s983_s7, 4294967024  ;;  %s2582_s8 = sshll.u32 %s4393_s24, 6  ;;  %s994_s26 = scalar_lea.vmem [#allocation25], %s4393_s24 }
 0x237   : > { %s1000_s5 = scalar_lea.sflag [#allocation27], %s4390_s27  ;;  %s4449_s0 = scalar_lea.vmem [#allocation26], %s2582_s8 }
 0x238   : > { %3547 = dma.done.wait (%p4821_p4), %s1000_s5, 1040  }
 0x239   : > { %3549 = vsyncadd (%p4821_p4), %s1000_s5, 4294966256  ;;  %s1011_s16 = scalar_lea.vmem [#allocation28], %s4393_s24  ;;  %s4458_s22 = scalar_lea.vmem [#allocation29], %s2576_s30 }
 0x23a   : > { %s4822_s7 = sld [smem:[#allocation44_spill]] }
 0x240   : > { %p2584_p6 = scmp.ne.s32.totalorder %s4822_s7, 0 }
 0x241   : > { %v1137_v0 = vld [vmem:[%s4383_s17] sm:$0xff] (!%p2584_p6)  ;;  %vm1138_vm0 = vcmask (!%p2584_p6), 261120  }
 0x242   : > { %1136 = sbr.rel (%p2584_p6) target bundleno = 585 (0x249), region = 160  ;;  %1139 = vst.msk [vmem:[%s4458_s22] sm:$0xff] (!%p2584_p6), %vm1138_vm0, %v1137_v0 }
 0x249 PF: > { %v4464_v1 = vld [vmem:[%s4458_s22] sm:$0xff]  ;;  %vm1143_vm1 = vcmask 261120   ;;  %v2924_v8 = vld [vmem:[%s902_s25] sm:$0xff]   ;;  %v3617_v9 = vmov 0.0   ;;  %vm3618_vm2 = vmmov 0   ;;  %s4823_s30 = scalar_lea.vmem [#allocation5], %s4393_s24 }
 0x24a   : > { %v1144_v2 = vsel %vm1143_vm1, %v4464_v1, 0.0  ;;  %2676 = vmatprep.subr.bf16.mxu0 %v3617_v9  ;;  %2680 = vmatprep.mubr.msk.bf16.mxu0 %vm3618_vm2, %v3617_v9  ;;  %v2925_v10 = vld [vmem:[%s902_s25 + $0x8] sm:$0xff]   ;;  %s4824_s17 = scalar_lea.vmem [#allocation7], %s4393_s24  ;;  %s4825_s20 = scalar_lea.vmem [#allocation11], %s4402_s28  ;;  %vm1368_vm3 = vcmask 64512   ;;  %vm1430_vm4 = vcmask 1043456  }
 0x24b   : > { %1145 = vadd.xlane.f32.xlu0 %v1144_v2  ;;  %2677 = vmatpush3.bf16.msra.mxu0 %v2924_v8  ;;  %v2585_v15 = vld [vmem:[%s4823_s30] ss:$0 sm:$0xff]  ;;  %v2926_v20 = vld [vmem:[%s4825_s20] sm:$0xff]   ;;  %s4826_s27 = smov %s4825_s20  ;;  %s4827_s25 = scalar_lea.vmem [#allocation14], %s4402_s28  ;;  %vm1823_vm5 = vcmask 130048   ;;  %vm1826_vm6 = vcmask 195584  }
 0x24c   : > { %2700 = vmatprep.subr.bf16.mxu1 %v3617_v9  ;;  %2678 = vmatprep.subr.bf16.mxu0 %v3617_v9  ;;  %v2586_v17 = vld [vmem:[%s4824_s17] ss:$0 sm:$0xff]  ;;  %v2927_v22 = vld [vmem:[%s4826_s27 + $0x8] sm:$0xff]   ;;  %s4828_s5 = smov %s4827_s25  ;;  %s4829_s8 = scalar_lea.vmem [#allocation13], %s4393_s24 }
 0x24d   : > { %2702 = vmatprep.mubr.msk.bf16.mxu1 %vm3618_vm2, %v3617_v9  ;;  %v2928_v23 = vld [vmem:[%s4827_s25] sm:$0xff]   ;;  %v2591_v29 = vld [vmem:[%s4829_s8] ss:$0 sm:$0xff]  ;;  %s4830_s7 = scalar_lea.vmem [#allocation10], %s4393_s24  ;;  %s3619_s30 = smov 112  }
 0x24e   : > { %v2929_v24 = vld [vmem:[%s4828_s5 + $0x8] sm:$0xff]   ;;  %v2587_v30 = vld [vmem:[%s4830_s7] ss:$0 sm:$0xff]  ;;  %s3620_s17 = smov 120   ;;  %s4831_s20 = scalar_lea.vmem [#allocation16], %s4393_s24 }
 0x24f   : > { %2679 = vmatpush3.bf16.msra.mxu0 %v2925_v10  ;;  %v2595_v39 = vld [vmem:[%s4831_s20] ss:$0 sm:$0xff]  ;;  %s3621_s27 = smov 104   ;;  %s4832_s25 = scalar_lea.vmem [#allocation17], %s4402_s28 }
 0x250   : > { %2684 = vmatprep.subr.bf16.mxu0 %v3617_v9  ;;  %s4833_s5 = smov %s4832_s25  ;;  %s3622_s8 = smov 8  }
 0x251   : > { %s3623_s7 = smov 16   ;;  %s4835_s20 = scalar_lea.vmem [#allocation23], %s4402_s28 }
 0x252   : > { %s4840_s28 = sld [smem:[#allocation53_spill]] }
 0x258   : > { %p4842_p10 = scmp.ne.s32.totalorder %s4840_s28, 0 }
 0x2d8   : > { %v1146_v3 = vpop.xlane.xlu0 %1145 }
 0x2d9   : > { %v1148_v4 = vmul.f32 0.03125, %v1146_v3 }
 0x2db   : > { %v1149_v5 = vsub.f32 %v4464_v1, %v1148_v4 }
 0x2dd   : > { %v1150_v6 = vmul.f32 %v1149_v5, %v1149_v5 }
 0x2df   : > { %v1151_v7 = vsel %vm1143_vm1, %v1150_v6, 0.0 }
 0x2e0   : > { %1152 = vadd.xlane.f32.xlu0 %v1151_v7 }
 0x36d   : > { %v1153_v11 = vpop.xlane.xlu0 %1152 }
 0x36e   : > { %v1154_v12 = vmul.f32 0.03125, %v1153_v11 }
 0x370   : > { %v1155_v13 = vadd.f32 1e-05, %v1154_v12 }
 0x372   : > { %2942 = vrsqrt.f32 %v1155_v13 }
 0x37c   : > { %v2943_v14 = vpop.eup %2942 }
 0x37d   : > { %v1157_v16 = vmul.f32 %v2943_v14, %v1149_v5 }
 0x37f   : > { %v1164_v18 = vmul.f32 %v2585_v15, %v1157_v16 }
 0x381   : > { %v1171_v19 = vadd.f32 %v2586_v17, %v1164_v18 }
 0x383   : > { %v1172_v21 = vpack.c.bf16 %v1171_v19, %v1171_v19 }
 0x385   : > { %2681 = vmatmul.mubr.msk.bf16.vlgmr.msra.gmra.mrb[0].mxu0 %vm1143_vm1, %v1172_v21 }
 0x386   : > { %2685 = vmatpush3.bf16.msra.mxu0 %v2926_v20  ;;  %2688 = vmatprep.mubr.msk.bf16.mxu0 %vm3618_vm2, %v3617_v9 }
 0x387   : > { %2686 = vmatprep.subr.bf16.mxu0 %v3617_v9 }
 0x38a   : > { %2687 = vmatpush3.bf16.msra.mxu0 %v2927_v22 }
 0x38b   : > { %2692 = vmatprep.subr.bf16.mxu0 %v3617_v9 }
 0x38d   : > { %2689 = vmatmul.mubr.msk.bf16.vlgmr.msra.gmra.mrb[4].mxu0 %vm1143_vm1, %v1172_v21 }
 0x38e   : > { %2693 = vmatpush3.bf16.msra.mxu0 %v2928_v23  ;;  %2696 = vmatprep.mubr.msk.bf16.mxu0 %vm3618_vm2, %v3617_v9 }
 0x38f   : > { %2694 = vmatprep.subr.bf16.mxu0 %v3617_v9 }
 0x392   : > { %2695 = vmatpush3.bf16.msra.mxu0 %v2929_v24 }
 0x393   : > { %2706 = vmatprep.subr.bf16.mxu0 %v3617_v9 }
 0x395   : > { %2697 = vmatmul.mubr.msk.bf16.vlgmr.msra.gmra.mrb[8].mxu0 %vm1143_vm1, %v1172_v21 }
 0x396   : > { %2708 = vmatprep.mubr.msk.bf16.mxu0 %vm3618_vm2, %v3617_v9 }
 0x458   : > { %v1233_v25 = vpop.f32.mrb[0].mxu0 }
 0x459   : > { %v2682_v26 = vpop.f32.mrb[1].mxu0  ;;  %v1234_v35 = vadd.f32 %v2587_v30, %v1233_v25 }
 0x45a   : > { %v1236_v27 = vpop.f32.mrb[2].mxu0 }
 0x45b   : > { %v2683_v28 = vpop.f32.mrb[3].mxu0  ;;  %v1365_v40 = vpack.c.bf16 %v1234_v35, %v1234_v35 }
 0x460   : > { %v1296_v31 = vpop.f32.mrb[4].mxu0 }
 0x461   : > { %v1297_v32 = vadd.f32 %v2591_v29, %v1296_v31  ;;  %v2690_v33 = vpop.f32.mrb[5].mxu0 }
 0x462   : > { %v1299_v34 = vpop.f32.mrb[6].mxu0 }
 0x463   : > { %v1366_v36 = vpack.c.bf16 %v1297_v32, %v1297_v32  ;;  %v2691_v37 = vpop.f32.mrb[7].mxu0 }
 0x465   : > { %1591 = vrot.lane.b32.xlu0 %v1366_v36, %s3619_s30  ;;  %1479 = vrot.lane.b32.xlu1 %v1366_v36, %s3620_s17  ;;  %v1373_v38 = vsel %vm1368_vm3, %v1366_v36, 0 }
 0x466   : > { %2701 = vmatpush3.bf16.xpose.msra.mxu1 %v1373_v38 }
 0x467   : > { %2712 = vmatprep.subr.bf16.mxu1 %v3617_v9 }
 0x468   : > { %v1359_v41 = vpop.f32.mrb[8].mxu0 }
 0x469   : > { %v1360_v42 = vadd.f32 %v2595_v39, %v1359_v41  ;;  %1476 = vrot.lane.b32.xlu1 %v1365_v40, %s3620_s17  ;;  %v2698_v43 = vpop.f32.mrb[9].mxu0 }
 0x46a   : > { %v1362_v44 = vpop.f32.mrb[10].mxu0 }
 0x46b   : > { %v4518_v45 = vpack.c.bf16 %v1360_v42, %v1360_v42  ;;  %v2699_v46 = vpop.f32.mrb[11].mxu0 }
 0x46d   : > { %1589 = vrot.lane.b32.xlu1 %v1365_v40, %s3619_s30  ;;  %2703 = vmatmul.mubr.msk.bf16.vlgmr.msra.gmra.mrb[0].mxu1 %vm1368_vm3, %v1365_v40  ;;  %v1432_v47 = vsel %vm1430_vm4, %v4518_v45, 0 }
 0x46e   : > { %2707 = vmatpush3.bf16.msra.mxu0 %v1432_v47  ;;  %2714 = vmatprep.mubr.msk.bf16.mxu1 %vm3618_vm2, %v3617_v9 }
 0x46f   : > { %2718 = vmatprep.subr.bf16.mxu0 %v3617_v9 }
 0x471   : > { %1702 = vrot.lane.b32.xlu1 %v1366_v36, %s3621_s27 }
 0x475   : > { %1700 = vrot.lane.b32.xlu1 %v1365_v40, %s3621_s27 }
 0x4d7   : > { %v1480_v48 = vpop.permute.xlu1 %1479  ;;  %v1592_v51 = vpop.permute.xlu0 %1591 }
 0x4d8   : > { %v1485_v49 = vsel %vm1368_vm3, %v1480_v48, 0  ;;  %v1597_v53 = vsel %vm1368_vm3, %v1592_v51, 0 }
 0x4d9   : > { %2713 = vmatpush3.bf16.xpose.msra.mxu1 %v1485_v49 }
 0x4da   : > { %2724 = vmatprep.subr.bf16.mxu1 %v3617_v9 }
 0x4db   : > { %v1477_v50 = vpop.permute.xlu1 %1476 }
 0x4df   : > { %v1590_v52 = vpop.permute.xlu1 %1589 }
 0x4e0   : > { %2715 = vmatmul.mubr.msk.bf16.vlgmr.msra.gmra.mrb[4].mxu1 %vm1368_vm3, %v1477_v50 }
 0x4e1   : > { %2725 = vmatpush3.bf16.xpose.msra.mxu1 %v1597_v53  ;;  %2726 = vmatprep.mubr.msk.bf16.mxu1 %vm3618_vm2, %v3617_v9 }
 0x4e2   : > { %2736 = vmatprep.subr.bf16.mxu1 %v3617_v9 }
 0x4e3   : > { %v1703_v54 = vpop.permute.xlu1 %1702 }
 0x4e4   : > { %v1708_v55 = vsel %vm1368_vm3, %v1703_v54, 0 }
 0x4e7   : > { %v1701_v56 = vpop.permute.xlu1 %1700 }
 0x4e8   : > { %2727 = vmatmul.mubr.msk.bf16.vlgmr.msra.gmra.mrb[8].mxu1 %vm1368_vm3, %v1590_v52 }
 0x4e9   : > { %2737 = vmatpush3.bf16.xpose.msra.mxu1 %v1708_v55  ;;  %2738 = vmatprep.mubr.msk.bf16.mxu1 %vm3618_vm2, %v3617_v9 }
 0x4ea   : > { %2748 = vmatprep.subr.bf16.mxu1 %v3617_v9 }
 0x4f0   : > { %2739 = vmatmul.mubr.msk.bf16.vlgmr.msra.gmra.mrb[12].mxu1 %vm1368_vm3, %v1701_v56 }
 0x4f1   : > { %2752 = vmatprep.mubr.msk.bf16.mxu1 %vm3618_vm2, %v3617_v9 }
 0x540   : > { %v1409_v57 = vpop.f32.mrb[0].mxu1 }
 0x541   : > { %v2704_v58 = vpop.f32.mrb[1].mxu1  ;;  %v1415_v59 = vsel %vm1368_vm3, %v1409_v57, -inf }
 0x542   : > { %1416 = vmax.xlane.f32.xlu1 %v1415_v59  ;;  %v1412_v60 = vpop.f32.mrb[2].mxu1 }
 0x543   : > { %v2705_v61 = vpop.f32.mrb[3].mxu1 }
 0x544   : > { %v2930_v61 = vld [vmem:[%s4832_s25] sm:$0xff]   ;;  %s4837_s25 = scalar_lea.vmem [#allocation20], %s4393_s24 }
 0x545   : > { %2749 = vmatpush3.bf16.msra.mxu1 %v2930_v61 }
 0x546   : > { %2750 = vmatprep.subr.bf16.mxu1 %v3617_v9 }
 0x5b3   : > { %v1521_v62 = vpop.f32.mrb[4].mxu1 }
 0x5b4   : > { %v2716_v63 = vpop.f32.mrb[5].mxu1  ;;  %v1527_v0 = vsel %vm1368_vm3, %v1521_v62, -inf }
 0x5b5   : > { %1528 = vmax.xlane.f32.xlu0 %v1527_v0  ;;  %v1524_v2 = vpop.f32.mrb[6].mxu1  ;;  %v2931_v63 = vld [vmem:[%s4833_s5 + $0x8] sm:$0xff]   ;;  %s4838_s5 = scalar_lea.vmem [#allocation22], %s4393_s24 }
 0x5b6   : > { %v2717_v3 = vpop.f32.mrb[7].mxu1  ;;  %2751 = vmatpush3.bf16.msra.mxu1 %v2931_v63 }
 0x5b7   : > { %2764 = vmatprep.subr.bf16.mxu1 %v3617_v9 }
 0x5bb   : > { %v1633_v4 = vpop.f32.mrb[8].mxu1 }
 0x5bc   : > { %v2728_v5 = vpop.f32.mrb[9].mxu1  ;;  %v1639_v6 = vsel %vm1368_vm3, %v1633_v4, -inf }
 0x5bd   : > { %1640 = vmax.xlane.f32.xlu1 %v1639_v6  ;;  %v1636_v7 = vpop.f32.mrb[10].mxu1 }
 0x5be   : > { %v2729_v8 = vpop.f32.mrb[11].mxu1 }
 0x5c3   : > { %v1744_v10 = vpop.f32.mrb[12].mxu1 }
 0x5c4   : > { %v2740_v11 = vpop.f32.mrb[13].mxu1  ;;  %v1750_v12 = vsel %vm1368_vm3, %v1744_v10, -inf }
 0x5c5   : > { %1751 = vmax.xlane.f32.xlu1 %v1750_v12  ;;  %v1747_v13 = vpop.f32.mrb[14].mxu1 }
 0x5c6   : > { %v2741_v14 = vpop.f32.mrb[15].mxu1 }
 0x5cf   : > { %v1417_v15 = vpop.xlane.xlu1 %1416 }
 0x5d0   : > { %v1418_v16 = vsub.f32 %v1409_v57, %v1417_v15 }
 0x5d2   : > { %v1419_v17 = vmul.f32 1.442695, %v1418_v16 }
 0x5d4   : > { %2944 = vpow2.f32 %v1419_v17 }
 0x5de   : > { %v2945_v18 = vpop.eup %2944 }
 0x5df   : > { %v1421_v19 = vsel %vm1368_vm3, %v2945_v18, 0.0 }
 0x5e0   : > { %1422 = vadd.xlane.f32.xlu0 %v1421_v19 }
 0x642   : > { %v1529_v20 = vpop.xlane.xlu0 %1528 }
 0x643   : > { %v1530_v21 = vsub.f32 %v1521_v62, %v1529_v20 }
 0x645   : > { %v1531_v22 = vmul.f32 1.442695, %v1530_v21 }
 0x647   : > { %2946 = vpow2.f32 %v1531_v22 }
 0x64a   : > { %v1641_v23 = vpop.xlane.xlu1 %1640 }
 0x64b   : > { %v1642_v24 = vsub.f32 %v1633_v4, %v1641_v23 }
 0x64d   : > { %v1643_v25 = vmul.f32 1.442695, %v1642_v24 }
 0x64f   : > { %2948 = vpow2.f32 %v1643_v25 }
 0x651   : > { %v2947_v26 = vpop.eup %2946 }
 0x652   : > { %v1533_v27 = vsel %vm1368_vm3, %v2947_v26, 0.0  ;;  %v1752_v31 = vpop.xlane.xlu1 %1751 }
 0x653   : > { %1534 = vadd.xlane.f32.xlu1 %v1533_v27  ;;  %v1753_v32 = vsub.f32 %v1744_v10, %v1752_v31 }
 0x655   : > { %v1754_v33 = vmul.f32 1.442695, %v1753_v32 }
 0x659   : > { %v2949_v28 = vpop.eup %2948 }
 0x65a   : > { %v1645_v29 = vsel %vm1368_vm3, %v2949_v28, 0.0 }
 0x65b   : > { %1646 = vadd.xlane.f32.xlu0 %v1645_v29 }
 0x664   : > { %1651 = vrot.lane.b32.xlu1 %v4518_v45, %s3619_s30  ;;  %s3624_s30 = smov 24  }
 0x66d   : > { %v1423_v30 = vpop.xlane.xlu0 %1422 }
 0x66e   : > { %2950 = vrcp.f32 %v1423_v30 }
 0x66f   : > { %2952 = vpow2.f32 %v1754_v33 }
 0x671   : > { %1540 = vrot.lane.b32.xlu0 %v4518_v45, %s3620_s17  ;;  %s4834_s17 = scalar_lea.vmem [#allocation19], %s4393_s24  ;;  %s2133_s24 = scalar_lea.sflag [#allocation4], %s4377_s2 }
 0x672   : > { %v2610_v24 = vld [vmem:[%s4834_s17] ss:$0 sm:$0xff]  ;;  %s4841_s17 = sld [smem:[#allocation67_spill]] }
 0x678   : > { %v2951_v34 = vpop.eup %2950 }
 0x679   : > { %v1425_v35 = vmul.f32 %v2951_v34, %v2945_v18  ;;  %v2953_v37 = vpop.eup %2952 }
 0x67a   : > { %v1756_v38 = vsel %vm1368_vm3, %v2953_v37, 0.0 }
 0x67b   : > { %v1426_v36 = vpack.c.bf16 %v1425_v35, %v1425_v35 }
 0x67d   : > { %2709 = vmatmul.mubr.msk.bf16.vlgmr.msra.gmra.mrb[12].mxu0 %vm1368_vm3, %v1426_v36 }
 0x67e   : > { %2720 = vmatprep.mubr.msk.bf16.mxu0 %vm3618_vm2, %v3617_v9 }
 0x688   : > { %1757 = vadd.xlane.f32.xlu1 %v1756_v38 }
 0x699   : > { %1762 = vrot.lane.b32.xlu1 %v4518_v45, %s3621_s27  ;;  %s4836_s27 = smov %s4835_s20 }
 0x69a   : > { %v2933_v36 = vld [vmem:[%s4836_s27 + $0x8] sm:$0xff]   ;;  %s3626_s27 = smov [#allocation29]  }
 0x6e0   : > { %v1535_v39 = vpop.xlane.xlu1 %1534 }
 0x6e1   : > { %2954 = vrcp.f32 %v1535_v39 }
 0x6e4   : > { %v1652_v46 = vpop.permute.xlu1 %1651 }
 0x6e5   : > { %v1657_v48 = vsel %vm1430_vm4, %v1652_v46, 0 }
 0x6e8   : > { %v1647_v40 = vpop.xlane.xlu0 %1646 }
 0x6e9   : > { %2956 = vrcp.f32 %v1647_v40 }
 0x6eb   : > { %v2955_v41 = vpop.eup %2954 }
 0x6ec   : > { %v1537_v42 = vmul.f32 %v2955_v41, %v2947_v26  ;;  %v1541_v43 = vpop.permute.xlu0 %1540  ;;  %v2611_v41 = vld [vmem:[%s4837_s25] ss:$0 sm:$0xff]  ;;  %s3446_s25 = sshll.u32 %s3626_s27, 4  ;;  %s3447_s25 = int_to_ptr.vmem [resolvable:$false] %s3446_s25 }
 0x6ed   : > { %v1546_v44 = vsel %vm1430_vm4, %v1541_v43, 0  ;;  %v2612_v43 = vld [vmem:[%s4838_s5] ss:$0 sm:$0xff]  ;;  %s3448_s5 = scalar_lea.vmem %s3447_s25, 256 }
 0x6ee   : > { %2719 = vmatpush3.bf16.msra.mxu0 %v1546_v44  ;;  %v1538_v47 = vpack.c.bf16 %v1537_v42, %v1537_v42 }
 0x6ef   : > { %2730 = vmatprep.subr.bf16.mxu0 %v3617_v9 }
 0x6f1   : > { %2721 = vmatmul.mubr.msk.bf16.vlgmr.msra.gmra.mrb[16].mxu0 %vm1368_vm3, %v1538_v47 }
 0x6f2   : > { %2731 = vmatpush3.bf16.msra.mxu0 %v1657_v48  ;;  %2732 = vmatprep.mubr.msk.bf16.mxu0 %vm3618_vm2, %v3617_v9  ;;  %v2934_v48 = vld [vmem:[%s4449_s0] sm:$0xff]  }
 0x6f3   : > { %v2957_v45 = vpop.eup %2956  ;;  %2742 = vmatprep.subr.bf16.mxu0 %v3617_v9 }
 0x6f4   : > { %v1649_v49 = vmul.f32 %v2957_v45, %v2949_v28  ;;  %v2935_v45 = vld [vmem:[%s4449_s0 + $0x8] sm:$0xff]  }
 0x6f6   : > { %v1650_v50 = vpack.c.bf16 %v1649_v49, %v1649_v49  ;;  %v2936_v49 = vld [vmem:[%s4449_s0 + $0x10] sm:$0xff]  }
 0x6f9   : > { %2733 = vmatmul.mubr.msk.bf16.vlgmr.msra.gmra.mrb[20].mxu0 %vm1368_vm3, %v1650_v50  ;;  %v2937_v50 = vld [vmem:[%s4449_s0 + $0x18] sm:$0xff]  }
 0x6fa   : > { %2744 = vmatprep.mubr.msk.bf16.mxu0 %vm3618_vm2, %v3617_v9 }
 0x715   : > { %v1758_v51 = vpop.xlane.xlu1 %1757 }
 0x716   : > { %2958 = vrcp.f32 %v1758_v51  ;;  %v2938_v51 = vld [vmem:[%s4449_s0 + $0x20] sm:$0xff]  }
 0x719   : > { %v1763_v52 = vpop.permute.xlu1 %1762 }
 0x71a   : > { %v1768_v53 = vsel %vm1430_vm4, %v1763_v52, 0  ;;  %v2939_v52 = vld [vmem:[%s4449_s0 + $0x28] sm:$0xff]  }
 0x71b   : > { %2743 = vmatpush3.bf16.msra.mxu0 %v1768_v53  ;;  %v2940_v53 = vld [vmem:[%s4449_s0 + $0x30] sm:$0xff]  }
 0x71c   : > { %2756 = vmatprep.subr.bf16.mxu0 %v3617_v9 }
 0x720   : > { %v2959_v54 = vpop.eup %2958 }
 0x721   : > { %v1760_v55 = vmul.f32 %v2959_v54, %v2953_v37  ;;  %v2941_v54 = vld [vmem:[%s4449_s0 + $0x38] sm:$0xff]  }
 0x723   : > { %v1761_v56 = vpack.c.bf16 %v1760_v55, %v1760_v55  ;;  %v2613_v55 = vld [vmem:[%s994_s26] ss:$0 sm:$0xff]  ;;  %s4839_s26 = sld [smem:[#allocation45_spill]] }
 0x725   : > { %2745 = vmatmul.mubr.msk.bf16.vlgmr.msra.gmra.mrb[24].mxu0 %vm1368_vm3, %v1761_v56 }
 0x726   : > { %2760 = vmatprep.mubr.msk.bf16.mxu0 %vm3618_vm2, %v3617_v9 }
 0x729   : > { %s2627_s0 = sshll.u32 %s4839_s26, 7 }
 0x750   : > { %v1468_v57 = vpop.f32.mrb[12].mxu0 }
 0x751   : > { %v2710_v58 = vpop.f32.mrb[13].mxu0  ;;  %v1474_v17 = vpack.c.bf16 %v1468_v57, %v1468_v57 }
 0x752   : > { %v1471_v59 = vpop.f32.mrb[14].mxu0 }
 0x753   : > { %v2711_v60 = vpop.f32.mrb[15].mxu0 }
 0x7c4   : > { %v1582_v62 = vpop.f32.mrb[16].mxu0 }
 0x7c5   : > { %v1588_v0 = vpack.c.bf16 %v1582_v62, %v1582_v62  ;;  %v2722_v2 = vpop.f32.mrb[17].mxu0 }
 0x7c6   : > { %v1585_v3 = vpop.f32.mrb[18].mxu0 }
 0x7c7   : > { %1812 = vrot.lane.b32.xlu0 %v1588_v0, %s3622_s8  ;;  %v2723_v4 = vpop.f32.mrb[19].mxu0  ;;  %s2146_s8 = sshll.u32 %s4458_s22, 4  ;;  %s4632_s8 = int_to_ptr.vmem [resolvable:$true] %s2146_s8 }
 0x7c8   : > { %p3449_p2 = scmp.lt.s32.totalorder %s4632_s8, %s3447_s25 }
 0x7cc   : > { %v1693_v5 = vpop.f32.mrb[20].mxu0 }
 0x7cd   : > { %v1699_v6 = vpack.c.bf16 %v1693_v5, %v1693_v5  ;;  %v2734_v7 = vpop.f32.mrb[21].mxu0 }
 0x7ce   : > { %v1696_v8 = vpop.f32.mrb[22].mxu0 }
 0x7cf   : > { %1815 = vrot.lane.b32.xlu1 %v1699_v6, %s3623_s7  ;;  %v2735_v10 = vpop.f32.mrb[23].mxu0 }
 0x7f8   : > { %v1804_v11 = vpop.f32.mrb[24].mxu0 }
 0x7f9   : > { %v1810_v12 = vpack.c.bf16 %v1804_v11, %v1804_v11  ;;  %v2746_v13 = vpop.f32.mrb[25].mxu0 }
 0x7fa   : > { %v1807_v14 = vpop.f32.mrb[26].mxu0 }
 0x7fb   : > { %1818 = vrot.lane.b32.xlu0 %v1810_v12, %s3624_s30  ;;  %v2747_v15 = vpop.f32.mrb[27].mxu0 }
 0x839   : > { %v1813_v16 = vpop.permute.xlu0 %1812 }
 0x83a   : > { %v1822_v19 = vsel %vm1368_vm3, %v1474_v17, %v1813_v16 }
 0x841   : > { %v1816_v18 = vpop.permute.xlu1 %1815 }
 0x842   : > { %v1825_v20 = vsel %vm1823_vm5, %v1822_v19, %v1816_v18  ;;  %v3625_v18 = vmov -1.0  }
 0x86d   : > { %v1819_v21 = vpop.permute.xlu0 %1818 }
 0x86e   : > { %v1828_v22 = vsel %vm1826_vm6, %v1825_v20, %v1819_v21 }
 0x86f   : > { %2753 = vmatmul.mubr.msk.bf16.vlgmr.msra.gmra.mrb[16].mxu1 %vm1143_vm1, %v1828_v22 }
 0x870   : > { %2780 = vmatprep.mubr.msk.bf16.mxu1 %vm3618_vm2, %v3617_v9  ;;  %2765 = vmatpush3.bf16.msra.mxu1 %v2934_v48 }
 0x871   : > { %2766 = vmatprep.subr.bf16.mxu1 %v3617_v9 }
 0x874   : > { %2767 = vmatpush3.bf16.msra.mxu1 %v2935_v45 }
 0x875   : > { %2768 = vmatprep.subr.bf16.mxu1 %v3617_v9 }
 0x878   : > { %2769 = vmatpush3.bf16.msra.mxu1 %v2936_v49 }
 0x879   : > { %2770 = vmatprep.subr.bf16.mxu1 %v3617_v9 }
 0x87c   : > { %2771 = vmatpush3.bf16.msra.mxu1 %v2937_v50 }
 0x87d   : > { %2772 = vmatprep.subr.bf16.mxu1 %v3617_v9 }
 0x880   : > { %2773 = vmatpush3.bf16.msra.mxu1 %v2938_v51 }
 0x881   : > { %2774 = vmatprep.subr.bf16.mxu1 %v3617_v9 }
 0x884   : > { %2775 = vmatpush3.bf16.msra.mxu1 %v2939_v52 }
 0x885   : > { %2776 = vmatprep.subr.bf16.mxu1 %v3617_v9 }
 0x888   : > { %2777 = vmatpush3.bf16.msra.mxu1 %v2940_v53 }
 0x889   : > { %2778 = vmatprep.subr.bf16.mxu1 %v3617_v9 }
 0x88c   : > { %2779 = vmatpush3.bf16.msra.mxu1 %v2941_v54 }
 0x942   : > { %v1881_v23 = vpop.f32.mrb[16].mxu1 }
 0x943   : > { %v1887_v25 = vadd.f32 %v1881_v23, %v4464_v1  ;;  %v2754_v26 = vpop.f32.mrb[17].mxu1  ;;  %v2932_v1 = vld [vmem:[%s4835_s20] sm:$0xff]   ;;  %s4630_s20 = scalar_lea.hbm %s4841_s17, %s2627_s0 }
 0x944   : > { %v1884_v27 = vpop.f32.mrb[18].mxu1  ;;  %2757 = vmatpush3.bf16.msra.mxu0 %v2932_v1 }
 0x945   : > { %v4589_v28 = vadd.f32 %v2610_v24, %v1887_v25  ;;  %v2755_v29 = vpop.f32.mrb[19].mxu1  ;;  %2758 = vmatprep.subr.bf16.mxu0 %v3617_v9  ;;  %v2617_v25 = vld [vmem:[%s1011_s16] ss:$0 sm:$0xff]  ;;  %s3442_s16 = scalar_lea.vmem %s4632_s8, 128 }
 0x946   : > { %p3443_p7 = scmp.ne.s32.totalorder %s4632_s8, %s3442_s16  ;;  %p3450_p11 = scmp.lt.s32.totalorder %s3448_s5, %s3442_s16 }
 0x947   : > { %v1898_v30 = vsel %vm1143_vm1, %v4589_v28, 0.0 }
 0x948   : > { %1899 = vadd.xlane.f32.xlu1 %v1898_v30  ;;  %2759 = vmatpush3.bf16.msra.mxu0 %v2933_v36  ;;  %p3444_p8 = pnand %p3443_p7, %p4842_p10  ;;  %p3451_p9 = por %p3450_p11, %p3449_p2 }
 0x94a   : > { %p3445_p13 = pneg %p3444_p8 }
 0x94c   : > { %p3452_p1 = pnand %p3451_p9, %p3445_p13 }
 0x9d5   : > { %v1900_v31 = vpop.xlane.xlu1 %1899 }
 0x9d6   : > { %v1901_v32 = vmul.f32 0.03125, %v1900_v31 }
 0x9d8   : > { %v1902_v33 = vsub.f32 %v4589_v28, %v1901_v32 }
 0x9da   : > { %v1903_v34 = vmul.f32 %v1902_v33, %v1902_v33 }
 0x9dc   : > { %v1904_v35 = vsel %vm1143_vm1, %v1903_v34, 0.0 }
 0x9dd   : > { %1905 = vadd.xlane.f32.xlu0 %v1904_v35 }
 0xa6a   : > { %v1906_v37 = vpop.xlane.xlu0 %1905 }
 0xa6b   : > { %v1907_v38 = vmul.f32 0.03125, %v1906_v37 }
 0xa6d   : > { %v1908_v39 = vadd.f32 1e-05, %v1907_v38 }
 0xa6f   : > { %2960 = vrsqrt.f32 %v1908_v39 }
 0xa79   : > { %v2961_v40 = vpop.eup %2960 }
 0xa7a   : > { %v1910_v42 = vmul.f32 %v2961_v40, %v1902_v33 }
 0xa7c   : > { %v1917_v44 = vmul.f32 %v2611_v41, %v1910_v42 }
 0xa7e   : > { %v1924_v46 = vadd.f32 %v2612_v43, %v1917_v44 }
 0xa80   : > { %v1925_v47 = vpack.c.bf16 %v1924_v46, %v1924_v46 }
 0xa82   : > { %2761 = vmatmul.mubr.msk.bf16.vlgmr.msra.gmra.mrb[28].mxu0 %vm1143_vm1, %v1925_v47 }
 0xb55   : > { %v1986_v56 = vpop.f32.mrb[28].mxu0 }
 0xb56   : > { %v1987_v57 = vadd.f32 %v2613_v55, %v1986_v56  ;;  %v2762_v58 = vpop.f32.mrb[29].mxu0 }
 0xb57   : > { %v1989_v59 = vpop.f32.mrb[30].mxu0 }
 0xb58   : > { %v1993_v60 = vmul.f32 0.70710677, %v1987_v57  ;;  %v2763_v61 = vpop.f32.mrb[31].mxu0  ;;  %v1992_v21 = vmul.f32 0.5, %v1987_v57 }
 0xb5a   : > { %v1996_v62 = vand.u32 2147483647, %v1993_v60  ;;  %vm1994_vm7 = vcmp.ge.f32.partialorder %v1993_v60, 0.0 }
 0xb5b   : > { %v1995_v19 = vsel %vm1994_vm7, 1.0, %v3625_v18 }
 0xb5c   : > { %v1997_v63 = vmul.f32 0.3275911, %v1996_v62  ;;  %v2009_v2 = vsub.f32 0.0, %v1996_v62 }
 0xb5e   : > { %v1998_v0 = vadd.f32 1.0, %v1997_v63  ;;  %v2010_v4 = vmul.f32 %v2009_v2, %v1996_v62 }
 0xb60   : > { %2962 = vrcp.f32 %v1998_v0  ;;  %v2011_v9 = vmul.f32 1.442695, %v2010_v4 }
 0xb62   : > { %2964 = vpow2.f32 %v2011_v9 }
 0xb6a   : > { %v2963_v3 = vpop.eup %2962 }
 0xb6b   : > { %v2000_v5 = vmul.f32 1.0614054, %v2963_v3 }
 0xb6c   : > { %v2965_v15 = vpop.eup %2964 }
 0xb6d   : > { %v2001_v6 = vadd.f32 -1.4531521, %v2000_v5 }
 0xb6f   : > { %v2002_v7 = vmul.f32 %v2963_v3, %v2001_v6 }
 0xb71   : > { %v2003_v8 = vadd.f32 1.4214138, %v2002_v7 }
 0xb73   : > { %v2004_v10 = vmul.f32 %v2963_v3, %v2003_v8 }
 0xb75   : > { %v2005_v11 = vadd.f32 -0.28449672, %v2004_v10 }
 0xb77   : > { %v2006_v12 = vmul.f32 %v2963_v3, %v2005_v11 }
 0xb79   : > { %v2007_v13 = vadd.f32 0.2548296, %v2006_v12 }
 0xb7b   : > { %v2008_v14 = vmul.f32 %v2963_v3, %v2007_v13 }
 0xb7d   : > { %v2013_v16 = vmul.f32 %v2965_v15, %v2008_v14 }
 0xb7f   : > { %v2014_v17 = vsub.f32 1.0, %v2013_v16 }
 0xb81   : > { %v2015_v20 = vmul.f32 %v2014_v17, %v1995_v19 }
 0xb83   : > { %v2016_v22 = vadd.f32 1.0, %v2015_v20 }
 0xb85   : > { %v2017_v23 = vmul.f32 %v2016_v22, %v1992_v21 }
 0xb87   : > { %v2018_v24 = vpack.c.bf16 %v2017_v23, %v2017_v23 }
 0xb89   : > { %2781 = vmatmul.mubr.bf16.vlgmr.msra.gmra.mrb[20].mxu1 %v2018_v24 }
 0xc5c   : > { %v2124_v26 = vpop.f32.mrb[20].mxu1 }
 0xc5d   : > { %v2125_v27 = vadd.f32 %v2617_v25, %v2124_v26  ;;  %v2782_v29 = vpop.f32.mrb[21].mxu1 }
 0xc5e   : > { %v2127_v30 = vpop.f32.mrb[22].mxu1 }
 0xc5f   : > { %v2130_v31 = vadd.f32 %v2125_v27, %v4589_v28  ;;  %v2783_v32 = vpop.f32.mrb[23].mxu1 }
 0xc61   : > { %2131 = vst.msk [vmem:[%s4458_s22] sm:$0xff] %vm1143_vm1, %v2130_v31 }
 0xc62   : > { %3455 = shalt.err (!%p3452_p1)
}
 0xc63   : > { %s3456_s2 = scalar_lea.hbm %s4630_s20, 128  ;;  %s3460_s0 = scalar_lea.hbm %s4841_s17, 256 }
 0xc64   : > { %p3457_p5 = scmp.ne.s32.totalorder %s4630_s20, %s3456_s2  ;;  %p3461_p0 = scmp.lt.u32.totalorder %s4630_s20, %s4841_s17 }
 0xc65   : > { %p3462_p4 = scmp.lt.u32.totalorder %s3460_s0, %s3456_s2  ;;  %p3464_p7 = scmp.lt.u32.totalorder %s3456_s2, %s4630_s20 }
 0xc66   : > { %p3458_p3 = pnand %p3457_p5, %p4842_p10 }
 0xc67   : > { %p3463_p6 = por %p3462_p4, %p3461_p0 }
 0xc68   : > { %p3459_p12 = pneg %p3458_p3 }
 0xc69   : > { %p3465_p8 = por %p3464_p7, %p3463_p6 }
 0xc6b   : > { %p3466_p13 = pnand %p3465_p8, %p3459_p12 }
 0xc6d   : > { %3469 = shalt.err (!%p3466_p13)
}
 0xc6e   : > { %2818 = dma.vmem_to_hbm [thread:$0]  (%p4842_p10), %s4632_s8, 128, %s4630_s20, %s2133_s24  }
 0xc6f PF: > { %s4843_s16 = sld [smem:[#allocation42_spill]]  ;;  %s4844_s27 = sld [smem:[#allocation54_spill]] }
 0xc70   : > { %p2824_p2 = scmp.ge.s32.totalorder %s3596_s1, 2 }
 0xc75   : > { %s2158_s25 = sand.u32 1, %s4843_s16   ;;  %p4845_p11 = scmp.ne.s32.totalorder %s4844_s27, 0 }
 0xc76   : > { %s2159_s5 = scalar_lea.sflag [#allocation4], %s2158_s25 }
 0xc77   : > { %p2821_p9 = pnand %p2824_p2, %p4845_p11 }
 0xc79   : > { %3551 = dma.done.wait (!%p2821_p9), %s2159_s5, 128  }
 0xc7a   : > { %3553 = vsyncadd (!%p2821_p9), %s2159_s5, 4294967168  ;;  %s57_s1 = sadd.s32 1, %s3596_s1   ;;  %s4846_s24 = sld [smem:[#allocation40_spill]] }
 0xc7b   : > { %p54_p1 = scmp.ge.s32.totalorder %s57_s1, 6   ;;  %s4847_s25 = sld [smem:[#allocation41_spill]] }
 0xc7c   : > { %s4848_s26 = sld [smem:[#allocation50_spill]]  ;;  %s4849_s27 = sld [smem:[#allocation43_spill]] }
 0xc7d   : > { %s4850_s8 = sld [smem:[#allocation51_spill]]  ;;  %s4851_s20 = sld [smem:[#allocation47_spill]] }
 0xc7e   : > { %s4852_s2 = sld [smem:[#allocation48_spill]]  ;;  %s4853_s28 = smov %s3576_s29 }
 0xc7f   : > { %s4855_s0 = smov %s3588_s18  ;;  %s4856_s30 = smov %s3592_s19 }
 0xc80   :  { %56 = sbr.rel (!%p54_p1) target bundleno = 39 (0x27), region = 329 }
 0xc83   : > { %s4854_s29 = smov %s4850_s8  ;;  %s4857_s18 = smov %s4851_s20 }
 0xc84   : > { %s4858_s19 = smov %s4852_s2 }
 0xc87   :  { %2164 = vsyncpa [#allocation3], 1 }
 0xc88   :  { %2166 = vsyncpa [#allocation3 + $0x1], 1 }
 0xc89   :  { %2167 = vsyncpa [#allocation6], 1 }
 0xc8a   :  { %2169 = vsyncpa [#allocation6 + $0x1], 1 }
 0xc8b   :  { %2170 = vsyncpa [#allocation9], 1 }
 0xc8c   :  { %2172 = vsyncpa [#allocation9 + $0x1], 1 }
 0xc8d   :  { %2173 = vsyncpa [#allocation12], 1 }
 0xc8e   :  { %2175 = vsyncpa [#allocation12 + $0x1], 1 }
 0xc8f   :  { %2176 = vsyncpa [#allocation15], 1 }
 0xc90   :  { %2178 = vsyncpa [#allocation15 + $0x1], 1 }
 0xc91   :  { %2179 = vsyncpa [#allocation18], 1 }
 0xc92   :  { %2181 = vsyncpa [#allocation18 + $0x1], 1 }
 0xc93   :  { %2182 = vsyncpa [#allocation21], 1 }
 0xc94   :  { %2184 = vsyncpa [#allocation21 + $0x1], 1 }
 0xc95   :  { %2185 = vsyncpa [#allocation24], 1 }
 0xc96   :  { %2187 = vsyncpa [#allocation24 + $0x1], 1 }
 0xc97   :  { %2188 = vsyncpa [#allocation27], 1 }
 0xc98   :  { %2190 = vsyncpa [#allocation27 + $0x1], 1 }
 0xc99   :  { %2191 = vsyncpa [#allocation4], 1 }
 0xc9a   :  { %2193 = vsyncpa [#allocation4 + $0x1], 1 }

</bundles_post_ra>
